<compile_context>
chip_gen: v6e
topology: v6e:2x2x1
jax: 0.10.0
libtpu: 0.0.40
codegen_flags: <defaults>
</compile_context>

<pallas_src>
import jax
import jax.numpy as jnp
from jax import lax
from jax.experimental import pallas as pl
from jax.experimental.pallas import tpu as pltpu

_EPS = 1e-16  # torch_geometric softmax denominator epsilon


def _attn_pool_kernel(batch_ref, x_ref, wg_ref, wn_ref,
                      acc_ref, glog_ref, m_ref, l_ref):
    """Grid = (splits, node_tiles).  Per (s, t): gate-logit row, feature matmul and a
    flash-style online segment-softmax update of the per-split (m, l, acc) state."""
    t = pl.program_id(1)

    @pl.when(t == 0)
    def _init():
        acc_ref[...] = jnp.zeros_like(acc_ref)
        m_ref[...] = jnp.full_like(m_ref, -jnp.inf)
        l_ref[...] = jnp.zeros_like(l_ref)

    x = x_ref[...]                                      # (Nt, F), mxu dtype

    # gate logits, lane-dense row: (1, Nt) = (1, F) . (Nt, F)  (contract F vs F)
    g_row = lax.dot_general(wg_ref[...], x, (((1,), (1,)), ((), ())),
                            preferred_element_type=jnp.float32)
    glog_ref[...] = g_row

    # transformed node features (f32 accumulate); nn bias folded into the epilogue.
    h = jnp.dot(x, wn_ref[...], preferred_element_type=jnp.float32)   # (Nt, H)

    m_prev = m_ref[0]                                   # (B, 1)
    num_graphs = m_prev.shape[0]
    nt = g_row.shape[1]
    # dense one-hot graph membership of this tile's nodes: (B, Nt)
    # TODO(synk): for num_graphs in the hundreds, tile the graph axis or use
    # scalar-prefetched per-graph node offsets instead of this dense mask.
    member = lax.broadcasted_iota(jnp.int32, (num_graphs, nt), 0) == batch_ref[...]

    neg_inf = jnp.float32(-jnp.inf)
    tile_max = jnp.max(jnp.where(member, g_row, neg_inf), axis=1, keepdims=True)
    m_new = jnp.maximum(m_prev, tile_max)                              # (B, 1)
    alpha = jnp.where(m_prev > neg_inf, jnp.exp(m_prev - m_new), 0.0)  # (B, 1)

    # un-normalized, per-graph-masked softmax weights for this tile: (B, Nt)
    p = jnp.where(member, jnp.exp(g_row - m_new), 0.0)

    l_ref[0] = alpha * l_ref[0] + jnp.sum(p, axis=1, keepdims=True)
    # scatter_add as a single masked (B, Nt) @ (Nt, H) MXU matmul
    acc_ref[0] = alpha * acc_ref[0] + jnp.dot(p, h, preferred_element_type=jnp.float32)
    m_ref[0] = m_new


def _gate_norm_kernel(batch_ref, glog_ref, m_ref, invl_ref, gate_ref):
    """Normalize stored logits with final per-graph (m, 1/l): multiply-only per node."""
    num_graphs = m_ref.shape[0]
    nt = glog_ref.shape[1]
    member = lax.broadcasted_iota(jnp.int32, (num_graphs, nt), 0) == batch_ref[...]
    node_m = jnp.sum(jnp.where(member, m_ref[...], 0.0), axis=0, keepdims=True)     # (1,Nt)
    node_invl = jnp.sum(jnp.where(member, invl_ref[...], 0.0), axis=0, keepdims=True)
    gate_ref[...] = (jnp.exp(glog_ref[...] - node_m) * node_invl).astype(gate_ref.dtype)


def global_attention(x, batch, num_graphs, wg, bg, wn, bn, *,
                     tile_n=512, num_splits=1, mxu_dtype=jnp.bfloat16):
    """Pallas forward of my_GlobalAttention (gate_nn=Linear(F,1), nn=Linear(F,H)).

    x:      (N, F) node features
    batch:  (N,)   int graph id per node, values in [0, num_graphs)
    wg, bg: gate_nn weight (1, F) and bias (1,)
    wn, bn: nn weight (H, F) and bias (H,)
    tile_n:     node-tile size (multiple of 128; 512 is a good default)
    num_splits: shards of the node reduction (set 2 on v7x to use both TensorCores)
    mxu_dtype:  dtype streamed into the MXU (bf16 fast path; float32 exact path)
    Returns (out: (num_graphs, H), gate: (N, 1)).
    """
    n, f = x.shape
    h_dim = wn.shape[0]
    out_dtype = x.dtype
    assert tile_n % 128 == 0, "tile_n must be a multiple of 128"

    chunk = tile_n * num_splits
    n_pad = chunk * pl.cdiv(n, chunk)
    tps = n_pad // chunk                                  # node tiles per split

    batch_row = batch.reshape(1, n).astype(jnp.int32)
    x_mx = x.astype(mxu_dtype)
    if n_pad != n:
        x_mx = jnp.pad(x_mx, ((0, n_pad - n), (0, 0)))
        # padded nodes get an out-of-range graph id -> masked out everywhere
        batch_row = jnp.pad(batch_row, ((0, 0), (0, n_pad - n)),
                            constant_values=num_graphs)

    # Host-side layout plumbing (free): pre-transpose nn weight, row-ify params.
    # NOTE: gate_nn bias `bg` shifts every logit of a graph by the same constant, so
    # the segment softmax (and both module outputs) is invariant to it -> unused.
    del bg
    wg_row = wg.reshape(1, f).astype(mxu_dtype)
    wn_t = wn.T.astype(mxu_dtype)                         # (F, H)
    bn_row = bn.reshape(1, h_dim).astype(jnp.float32)

    grid = (num_splits, tps)

    acc_p, glog, m_p, l_p = pl.pallas_call(
        _attn_pool_kernel,
        out_shape=(
            jax.ShapeDtypeStruct((num_splits, num_graphs, h_dim), jnp.float32),
            jax.ShapeDtypeStruct((1, n_pad), jnp.float32),          # gate logits
            jax.ShapeDtypeStruct((num_splits, num_graphs, 1), jnp.float32),   # max
            jax.ShapeDtypeStruct((num_splits, num_graphs, 1), jnp.float32),   # denom
        ),
        grid_spec=pltpu.PrefetchScalarGridSpec(
            num_scalar_prefetch=0,
            grid=grid,
            in_specs=[
                pl.BlockSpec((1, tile_n), lambda s, t: (0, s * tps + t)),   # batch ids
                pl.BlockSpec((tile_n, f), lambda s, t: (s * tps + t, 0)),   # x tile
                pl.BlockSpec((1, f), lambda s, t: (0, 0)),                  # gate weight
                pl.BlockSpec((f, h_dim), lambda s, t: (0, 0)),              # nn weight^T
            ],
            out_specs=[
                pl.BlockSpec((1, num_graphs, h_dim), lambda s, t: (s, 0, 0)),   # acc
                pl.BlockSpec((1, tile_n), lambda s, t: (0, s * tps + t)),       # logits
                pl.BlockSpec((1, num_graphs, 1), lambda s, t: (s, 0, 0)),       # m
                pl.BlockSpec((1, num_graphs, 1), lambda s, t: (s, 0, 0)),       # l
            ],
        ),
        compiler_params=pltpu.CompilerParams(
            dimension_semantics=("parallel", "arbitrary")),   # splits || ; tiles = reduction
    )(batch_row, x_mx, wg_row, wn_t)

    # --- tiny XLA epilogue: merge per-split online-softmax states, fold nn bias ---
    neg_inf = jnp.float32(-jnp.inf)
    m_fin = jnp.max(m_p, axis=0)                                       # (B, 1)
    scale = jnp.where(m_p > neg_inf, jnp.exp(m_p - m_fin), 0.0)        # (S, B, 1)
    l_fin = jnp.sum(scale * l_p, axis=0)                               # (B, 1)
    acc = jnp.sum(scale * acc_p, axis=0)                               # (B, H)
    inv_l = 1.0 / (l_fin + _EPS)                                       # (B, 1)
    out = jnp.where(l_fin > 0, acc * inv_l + bn_row, 0.0).astype(out_dtype)

    # --- kernel B: per-node gate normalization (multiply by precomputed 1/l) ---
    gate_row = pl.pallas_call(
        _gate_norm_kernel,
        out_shape=jax.ShapeDtypeStruct((1, n_pad), out_dtype),
        grid_spec=pltpu.PrefetchScalarGridSpec(
            num_scalar_prefetch=0,
            grid=(n_pad // tile_n,),
            in_specs=[
                pl.BlockSpec((1, tile_n), lambda i: (0, i)),        # batch ids
                pl.BlockSpec((1, tile_n), lambda i: (0, i)),        # gate logits
                pl.BlockSpec((num_graphs, 1), lambda i: (0, 0)),    # final m
                pl.BlockSpec((num_graphs, 1), lambda i: (0, 0)),    # final 1/l
            ],
            out_specs=pl.BlockSpec((1, tile_n), lambda i: (0, i)),
        ),
        compiler_params=pltpu.CompilerParams(
            dimension_semantics=("parallel",)),
    )(batch_row, glog, m_fin, inv_l)

    gate = gate_row[0, :n].reshape(n, 1)
    return out, gate


def global_attention_ref(x, batch, num_graphs, wg, bg, wn, bn):
    # pure-JAX reference mirroring the PyTorch forward (segment softmax + scatter_add)
    gate = x @ wg.T + bg                                               # (N, 1)
    h = x @ wn.T + bn                                                  # (N, H)
    m = jax.ops.segment_max(gate, batch, num_segments=num_graphs)      # (B, 1)
    e = jnp.exp(gate - m[batch])
    l = jax.ops.segment_sum(e, batch, num_segments=num_graphs)         # (B, 1)
    soft = e / (l + _EPS)[batch]
    out = jax.ops.segment_sum(soft * h, batch, num_segments=num_graphs)
    return out, soft


if __name__ == "__main__":
    # N nodes with F features pooled into B graphs; nn maps F -> H.
    N, F, H, B = 1600, 128, 128, 8
    key = jax.random.PRNGKey(0)
    ks = jax.random.split(key, 6)

    x = jax.random.normal(ks[0], (N, F), dtype=jnp.float32)
    # sorted graph ids; graph B-1 is deliberately empty to exercise scatter_add
    # semantics for empty graphs (its output row must stay exactly 0).
    batch = jnp.sort(jax.random.randint(ks[1], (N,), 0, B - 1)).astype(jnp.int32)

    wg = jax.random.normal(ks[2], (1, F), dtype=jnp.float32) / jnp.sqrt(F)   # gate_nn
    bg = 0.1 * jax.random.normal(ks[3], (1,), dtype=jnp.float32)
    wn = jax.random.normal(ks[4], (H, F), dtype=jnp.float32) / jnp.sqrt(F)   # nn
    bn = 0.1 * jax.random.normal(ks[5], (H,), dtype=jnp.float32)

    out_ref, gate_ref = global_attention_ref(x, batch, B, wg, bg, wn, bn)

    # Exact path (f32 MXU), reduction split across 2 cores (v7x-style layout; on
    # single-TC chips the split just runs serially and is still correct).
    out32, gate32 = global_attention(x, batch, B, wg, bg, wn, bn,
                                     tile_n=512, num_splits=2,
                                     mxu_dtype=jnp.float32)
    out32, gate32 = jax.block_until_ready((out32, gate32))
    assert out32.shape == (B, H) and gate32.shape == (N, 1)
    assert jnp.allclose(out32, out_ref, atol=2e-4, rtol=1e-3), \
        float(jnp.max(jnp.abs(out32 - out_ref)))
    assert jnp.allclose(gate32, gate_ref, atol=2e-5, rtol=1e-3), \
        float(jnp.max(jnp.abs(gate32 - gate_ref)))

    # Fast path: bf16 MXU streams (halves x DMA bytes, native-rate MXU), f32 softmax.
    outbf, gatebf = global_attention(x, batch, B, wg, bg, wn, bn,
                                     tile_n=512, num_splits=1,
                                     mxu_dtype=jnp.bfloat16)
    outbf, gatebf = jax.block_until_ready((outbf, gatebf))
    assert jnp.allclose(outbf, out_ref, atol=5e-2, rtol=5e-2), \
        float(jnp.max(jnp.abs(outbf - out_ref)))
    assert jnp.allclose(gatebf, gate_ref, atol=2e-3, rtol=5e-2), \
        float(jnp.max(jnp.abs(gatebf - gate_ref)))

    print("KERNEL_OK")
</pallas_src>

<mosaic_0001>
module attributes {stable_mosaic.version = 11 : i64} {
  func.func @_attn_pool_kernel(%arg0: i32, %arg1: i32, %arg2: memref<1x512xi32, #tpu.memory_space<vmem>>, %arg3: memref<512x128xf32, #tpu.memory_space<vmem>>, %arg4: memref<1x128xf32, #tpu.memory_space<vmem>>, %arg5: memref<128x128xf32, #tpu.memory_space<vmem>>, %arg6: memref<1x8x128xf32, #tpu.memory_space<vmem>>, %arg7: memref<1x512xf32, #tpu.memory_space<vmem>>, %arg8: memref<1x8x1xf32, #tpu.memory_space<vmem>>, %arg9: memref<1x8x1xf32, #tpu.memory_space<vmem>>) attributes {dimension_semantics = [#tpu.dimension_semantics<parallel>, #tpu.dimension_semantics<arbitrary>], iteration_bounds = array<i64: 2, 2>, scalar_prefetch = 0 : i64, scratch_operands = 0 : i64, tpu.core_type = #tpu.core_type<tc>, window_params = [{transform_indices = @transform_0, window_bounds = array<i64: 1, 512>}, {transform_indices = @transform_1, window_bounds = array<i64: 512, 128>}, {pipeline_mode = #tpu.pipeline_mode<synchronous>, transform_indices = @transform_2, window_bounds = array<i64: 1, 128>}, {pipeline_mode = #tpu.pipeline_mode<synchronous>, transform_indices = @transform_3, window_bounds = array<i64: 128, 128>}, {transform_indices = @transform_4, window_bounds = array<i64: 1, 8, 128>}, {transform_indices = @transform_5, window_bounds = array<i64: 1, 512>}, {transform_indices = @transform_6, window_bounds = array<i64: 1, 8, 1>}, {transform_indices = @transform_7, window_bounds = array<i64: 1, 8, 1>}]} {
    %c0_i32 = arith.constant 0 : i32
    %0 = arith.cmpi eq, %arg1, %c0_i32 : i32
    %1 = arith.extui %0 : i1 to i32
    %c0_i32_0 = arith.constant 0 : i32
    %2 = arith.cmpi ne, %1, %c0_i32_0 : i32
    scf.if %2 {
      %cst_36 = arith.constant 0.000000e+00 : f32
      %55 = vector.broadcast %cst_36 : f32 to vector<1x8x128xf32>
      %c0_37 = arith.constant 0 : index
      %c0_38 = arith.constant 0 : index
      %c0_39 = arith.constant 0 : index
      %56 = vector.load %arg6[%c0_37, %c0_38, %c0_39] : memref<1x8x128xf32, #tpu.memory_space<vmem>>, vector<1x8x128xf32>
      tpu.vector_store %arg6[%c0_37, %c0_38, %c0_39], %55 {strides = array<i32>} : memref<1x8x128xf32, #tpu.memory_space<vmem>>, vector<1x8x128xf32>,
      %cst_40 = arith.constant 0xFF800000 : f32
      %57 = vector.broadcast %cst_40 : f32 to vector<1x8x1xf32>
      %c0_41 = arith.constant 0 : index
      %c0_42 = arith.constant 0 : index
      %c0_43 = arith.constant 0 : index
      %58 = vector.load %arg8[%c0_41, %c0_42, %c0_43] : memref<1x8x1xf32, #tpu.memory_space<vmem>>, vector<1x8x1xf32>
      tpu.vector_store %arg8[%c0_41, %c0_42, %c0_43], %57 {strides = array<i32>} : memref<1x8x1xf32, #tpu.memory_space<vmem>>, vector<1x8x1xf32>,
      %cst_44 = arith.constant 0.000000e+00 : f32
      %59 = vector.broadcast %cst_44 : f32 to vector<1x8x1xf32>
      %c0_45 = arith.constant 0 : index
      %c0_46 = arith.constant 0 : index
      %c0_47 = arith.constant 0 : index
      %60 = vector.load %arg9[%c0_45, %c0_46, %c0_47] : memref<1x8x1xf32, #tpu.memory_space<vmem>>, vector<1x8x1xf32>
      tpu.vector_store %arg9[%c0_45, %c0_46, %c0_47], %59 {strides = array<i32>} : memref<1x8x1xf32, #tpu.memory_space<vmem>>, vector<1x8x1xf32>,
    } else {
    }
    %c0 = arith.constant 0 : index
    %c0_1 = arith.constant 0 : index
    %3 = vector.load %arg3[%c0, %c0_1] : memref<512x128xf32, #tpu.memory_space<vmem>>, vector<512x128xf32>
    %c0_2 = arith.constant 0 : index
    %c0_3 = arith.constant 0 : index
    %4 = vector.load %arg4[%c0_2, %c0_3] : memref<1x128xf32, #tpu.memory_space<vmem>>, vector<1x128xf32>
    %cst = arith.constant dense<0.000000e+00> : vector<1x512xf32>
    %5 = tpu.matmul %4, %3, %cst {dimension_numbers = #tpu.dot_dimension_numbers<[1], [1], [0], [0], [0, 0, 1, 0], [], []>} : vector<1x128xf32>, vector<512x128xf32>, vector<1x512xf32> -> vector<1x512xf32>
    %c0_4 = arith.constant 0 : index
    %c0_5 = arith.constant 0 : index
    %6 = vector.load %arg7[%c0_4, %c0_5] : memref<1x512xf32, #tpu.memory_space<vmem>>, vector<1x512xf32>
    tpu.vector_store %arg7[%c0_4, %c0_5], %5 {strides = array<i32>} : memref<1x512xf32, #tpu.memory_space<vmem>>, vector<1x512xf32>,
    %c0_6 = arith.constant 0 : index
    %c0_7 = arith.constant 0 : index
    %7 = vector.load %arg5[%c0_6, %c0_7] : memref<128x128xf32, #tpu.memory_space<vmem>>, vector<128x128xf32>
    %cst_8 = arith.constant dense<0.000000e+00> : vector<512x128xf32>
    %8 = tpu.matmul %3, %7, %cst_8 {dimension_numbers = #tpu.dot_dimension_numbers<[1], [0], [0], [1], [0, 0, 1, 1], [], []>} : vector<512x128xf32>, vector<128x128xf32>, vector<512x128xf32> -> vector<512x128xf32>
    %c0_9 = arith.constant 0 : index
    %c0_10 = arith.constant 0 : index
    %c0_11 = arith.constant 0 : index
    %9 = vector.load %arg8[%c0_9, %c0_10, %c0_11] : memref<1x8x1xf32, #tpu.memory_space<vmem>>, vector<1x8x1xf32>
    %10 = vector.shape_cast %9 : vector<1x8x1xf32> to vector<8x1xf32>
    %11 = tpu.iota {dimensions = array<i32: 0>} : vector<8x512xi32>
    %c0_12 = arith.constant 0 : index
    %c0_13 = arith.constant 0 : index
    %12 = vector.load %arg2[%c0_12, %c0_13] : memref<1x512xi32, #tpu.memory_space<vmem>>, vector<1x512xi32>
    %13 = vector.broadcast %12 : vector<1x512xi32> to vector<8x512xi32>
    %14 = arith.cmpi eq, %11, %13 : vector<8x512xi32>
    %cst_14 = arith.constant 0xFF800000 : f32
    %15 = vector.shape_cast %5 : vector<1x512xf32> to vector<1x512xf32>
    %16 = vector.broadcast %15 : vector<1x512xf32> to vector<8x512xf32>
    %17 = vector.broadcast %cst_14 : f32 to vector<8x512xf32>
    %18 = arith.select %14, %16, %17 : vector<8x512xi1>, vector<8x512xf32>
    %cst_15 = arith.constant dense<0xFF800000> : vector<8xf32>
    %19 = vector.multi_reduction <maximumf>, %18, %cst_15 [1] : vector<8x512xf32> to vector<8xf32>
    %20 = vector.shape_cast %19 : vector<8xf32> to vector<8x1xf32>
    %21 = arith.maximumf %10, %20 : vector<8x1xf32>
    %cst_16 = arith.constant 0xFF800000 : f32
    %22 = vector.broadcast %cst_16 : f32 to vector<8x1xf32>
    %23 = arith.cmpf ogt, %10, %22 : vector<8x1xf32>
    %24 = arith.subf %10, %21 : vector<8x1xf32>
    %25 = math.exp %24 : vector<8x1xf32>
    %cst_17 = arith.constant 0.000000e+00 : f32
    %26 = vector.broadcast %cst_17 : f32 to vector<8x1xf32>
    %27 = arith.select %23, %25, %26 : vector<8x1xi1>, vector<8x1xf32>
    %28 = vector.broadcast %5 : vector<1x512xf32> to vector<8x512xf32>
    %29 = vector.broadcast %21 : vector<8x1xf32> to vector<8x512xf32>
    %30 = arith.subf %28, %29 : vector<8x512xf32>
    %31 = math.exp %30 : vector<8x512xf32>
    %cst_18 = arith.constant 0.000000e+00 : f32
    %32 = vector.broadcast %cst_18 : f32 to vector<8x512xf32>
    %33 = arith.select %14, %31, %32 : vector<8x512xi1>, vector<8x512xf32>
    %c0_19 = arith.constant 0 : index
    %c0_20 = arith.constant 0 : index
    %c0_21 = arith.constant 0 : index
    %34 = vector.load %arg9[%c0_19, %c0_20, %c0_21] : memref<1x8x1xf32, #tpu.memory_space<vmem>>, vector<1x8x1xf32>
    %35 = vector.shape_cast %34 : vector<1x8x1xf32> to vector<8x1xf32>
    %36 = arith.mulf %27, %35 : vector<8x1xf32>
    %cst_22 = arith.constant dense<0.000000e+00> : vector<8xf32>
    %37 = vector.multi_reduction <add>, %33, %cst_22 [1] : vector<8x512xf32> to vector<8xf32>
    %38 = vector.shape_cast %37 : vector<8xf32> to vector<8x1xf32>
    %39 = arith.addf %36, %38 : vector<8x1xf32>
    %c0_23 = arith.constant 0 : index
    %c0_24 = arith.constant 0 : index
    %c0_25 = arith.constant 0 : index
    %40 = vector.load %arg9[%c0_23, %c0_24, %c0_25] : memref<1x8x1xf32, #tpu.memory_space<vmem>>, vector<1x8x1xf32>
    %41 = vector.shape_cast %40 : vector<1x8x1xf32> to vector<8x1xf32>
    %42 = vector.shape_cast %39 : vector<8x1xf32> to vector<1x8x1xf32>
    tpu.vector_store %arg9[%c0_23, %c0_24, %c0_25], %42 {strides = array<i32>} : memref<1x8x1xf32, #tpu.memory_space<vmem>>, vector<1x8x1xf32>,
    %c0_26 = arith.constant 0 : index
    %c0_27 = arith.constant 0 : index
    %c0_28 = arith.constant 0 : index
    %43 = vector.load %arg6[%c0_26, %c0_27, %c0_28] : memref<1x8x128xf32, #tpu.memory_space<vmem>>, vector<1x8x128xf32>
    %44 = vector.shape_cast %43 : vector<1x8x128xf32> to vector<8x128xf32>
    %45 = vector.broadcast %27 : vector<8x1xf32> to vector<8x128xf32>
    %46 = arith.mulf %45, %44 : vector<8x128xf32>
    %cst_29 = arith.constant dense<0.000000e+00> : vector<8x128xf32>
    %47 = tpu.matmul %33, %8, %cst_29 {dimension_numbers = #tpu.dot_dimension_numbers<[1], [0], [0], [1], [0, 0, 1, 1], [], []>} : vector<8x512xf32>, vector<512x128xf32>, vector<8x128xf32> -> vector<8x128xf32>
    %48 = arith.addf %46, %47 : vector<8x128xf32>
    %c0_30 = arith.constant 0 : index
    %c0_31 = arith.constant 0 : index
    %c0_32 = arith.constant 0 : index
    %49 = vector.load %arg6[%c0_30, %c0_31, %c0_32] : memref<1x8x128xf32, #tpu.memory_space<vmem>>, vector<1x8x128xf32>
    %50 = vector.shape_cast %49 : vector<1x8x128xf32> to vector<8x128xf32>
    %51 = vector.shape_cast %48 : vector<8x128xf32> to vector<1x8x128xf32>
    tpu.vector_store %arg6[%c0_30, %c0_31, %c0_32], %51 {strides = array<i32>} : memref<1x8x128xf32, #tpu.memory_space<vmem>>, vector<1x8x128xf32>,
    %c0_33 = arith.constant 0 : index
    %c0_34 = arith.constant 0 : index
    %c0_35 = arith.constant 0 : index
    %52 = vector.load %arg8[%c0_33, %c0_34, %c0_35] : memref<1x8x1xf32, #tpu.memory_space<vmem>>, vector<1x8x1xf32>
    %53 = vector.shape_cast %52 : vector<1x8x1xf32> to vector<8x1xf32>
    %54 = vector.shape_cast %21 : vector<8x1xf32> to vector<1x8x1xf32>
    tpu.vector_store %arg8[%c0_33, %c0_34, %c0_35], %54 {strides = array<i32>} : memref<1x8x1xf32, #tpu.memory_space<vmem>>, vector<1x8x1xf32>,
    return
  }
  func.func @transform_0(%arg0: i32, %arg1: i32) -> (i32, i32) {
    %c2_i32 = arith.constant 2 : i32
    %0 = arith.muli %arg0, %c2_i32 : i32
    %1 = arith.addi %0, %arg1 : i32
    %c0_i32 = arith.constant 0 : i32
    %c0_i32_0 = arith.constant 0 : i32
    return %c0_i32, %1 : i32, i32
  }
  func.func @transform_1(%arg0: i32, %arg1: i32) -> (i32, i32) {
    %c2_i32 = arith.constant 2 : i32
    %0 = arith.muli %arg0, %c2_i32 : i32
    %1 = arith.addi %0, %arg1 : i32
    %c0_i32 = arith.constant 0 : i32
    %c0_i32_0 = arith.constant 0 : i32
    return %1, %c0_i32 : i32, i32
  }
  func.func @transform_2(%arg0: i32, %arg1: i32) -> (i32, i32) {
    %c0_i32 = arith.constant 0 : i32
    %c0_i32_0 = arith.constant 0 : i32
    %c0_i32_1 = arith.constant 0 : i32
    return %c0_i32, %c0_i32_0 : i32, i32
  }
  func.func @transform_3(%arg0: i32, %arg1: i32) -> (i32, i32) {
    %c0_i32 = arith.constant 0 : i32
    %c0_i32_0 = arith.constant 0 : i32
    %c0_i32_1 = arith.constant 0 : i32
    return %c0_i32, %c0_i32_0 : i32, i32
  }
  func.func @transform_4(%arg0: i32, %arg1: i32) -> (i32, i32, i32) {
    %c0_i32 = arith.constant 0 : i32
    %c0_i32_0 = arith.constant 0 : i32
    %c0_i32_1 = arith.constant 0 : i32
    return %arg0, %c0_i32, %c0_i32_0 : i32, i32, i32
  }
  func.func @transform_5(%arg0: i32, %arg1: i32) -> (i32, i32) {
    %c2_i32 = arith.constant 2 : i32
    %0 = arith.muli %arg0, %c2_i32 : i32
    %1 = arith.addi %0, %arg1 : i32
    %c0_i32 = arith.constant 0 : i32
    %c0_i32_0 = arith.constant 0 : i32
    return %c0_i32, %1 : i32, i32
  }
  func.func @transform_6(%arg0: i32, %arg1: i32) -> (i32, i32, i32) {
    %c0_i32 = arith.constant 0 : i32
    %c0_i32_0 = arith.constant 0 : i32
    %c0_i32_1 = arith.constant 0 : i32
    return %arg0, %c0_i32, %c0_i32_0 : i32, i32, i32
  }
  func.func @transform_7(%arg0: i32, %arg1: i32) -> (i32, i32, i32) {
    %c0_i32 = arith.constant 0 : i32
    %c0_i32_0 = arith.constant 0 : i32
    %c0_i32_1 = arith.constant 0 : i32
    return %arg0, %c0_i32, %c0_i32_0 : i32, i32, i32
  }
}

</mosaic_0001>

<bundles_post_ra>
// kernel: tpu_custom_call.1
= control target key start
LH: loop header
LB: loop body
LE: loop exit
PB: predicated region body
PF: predicated region fallthrough
CT: control target
= control target key end

     0   :  { %s3178_s0 = inlined_call_operand.hbm [shape: s32[1,2048], index: 0, kind: input, shape index: {}]   ;;  %s3179_s1 = inlined_call_operand.hbm [shape: f32[2048,128], index: 1, kind: input, shape index: {}]   ;;  %s3180_s2 = inlined_call_operand.vmem [shape: f32[1,128], index: 2, kind: input, shape index: {}]   ;;  %s3181_s3 = inlined_call_operand.hbm [shape: f32[128,128], index: 3, kind: input, shape index: {}]   ;;  %s3182_s4 = inlined_call_operand.hbm [shape: f32[2,8,128], index: 4, kind: output, shape index: {0}]   ;;  %s3183_s5 = inlined_call_operand.hbm [shape: f32[1,2048], index: 5, kind: output, shape index: {1}]   ;;  %s3184_s6 = inlined_call_operand.vmem [shape: f32[2,8,1], index: 6, kind: output, shape index: {2}]   ;;  %s3185_s7 = inlined_call_operand.vmem [shape: f32[2,8,1], index: 7, kind: output, shape index: {3}]  }
   0x1   :  { %3211 = sst [smem:[#allocation33_spill]] %s3178_s0 }
   0x2   :  { %3212 = sst [smem:[#allocation34_spill]] %s3180_s2 }
   0x3   :  { %3213 = sst [smem:[#allocation35_spill]] %s3181_s3 }
   0x4   :  { %3214 = sst [smem:[#allocation36_spill]] %s3182_s4 }
   0x5   :  { %3215 = sst [smem:[#allocation37_spill]] %s3183_s5 }
   0x6   :  { %3216 = sst [smem:[#allocation38_spill]] %s3185_s7 }
   0x7   :  { %13 = vsyncpa [#allocation3], 0 }
   0x8   :  { %15 = vsyncpa [#allocation3 + $0x1], 0 }
   0x9   :  { %16 = vsyncpa [#allocation6], 0 }
   0xa   :  { %18 = vsyncpa [#allocation6 + $0x1], 0 }
   0xb   :  { %19 = vsyncpa [#allocation4], 0 }
   0xc   :  { %21 = vsyncpa [#allocation4 + $0x1], 0 }
   0xd   :  { %22 = vsyncpa [#allocation10], 0 }
   0xe   :  { %24 = vsyncpa [#allocation10 + $0x1], 0  ;;  %s2406_s24 = smov 0   ;;  %s2408_s25 = smov 0  }
   0xf   :  { %s2410_s26 = smov 0   ;;  %s2412_s27 = smov 0  }
  0x10   :  { %s2414_s28 = smov 0   ;;  %s2416_s29 = smov 0  }
  0x11   :  { %s2418_s30 = smov 0   ;;  %s2420_s8 = smov 0  }
  0x12   :  { %s2422_s9 = smov 0   ;;  %s2424_s10 = smov 0  }
  0x13   :  { %s2426_s11 = smov 0  }
  0x14 LB: > { %3217 = sst [smem:[#allocation16_spill]] %s2313_s24  ;;  %s2462_s12 = sadd.s32 4294967295, %s2353_s11   ;;  %s2353_s11 = sphi %s2426_s11, %s30_s11   ;;  %s2349_s10 = sphi %s2424_s10, %s3284_s10   ;;  %s2345_s9 = sphi %s2422_s9, %s3275_s9   ;;  %s2341_s8 = sphi %s2420_s8, %s3283_s8   ;;  %s2337_s30 = sphi %s2418_s30, %s3274_s30   ;;  %s2333_s29 = sphi %s2416_s29, %s3282_s29   ;;  %s2329_s28 = sphi %s2414_s28, %s3281_s28   ;;  %s2325_s27 = sphi %s2412_s27, %s3280_s27   ;;  %s2321_s26 = sphi %s2410_s26, %s3279_s26   ;;  %s2317_s25 = sphi %s2408_s25, %s3278_s25   ;;  %s2313_s24 = sphi %s2406_s24, %s3277_s24  }
  0x15   : > { %3218 = sst [smem:[#allocation17_spill]] %s2325_s27  ;;  %s1552_s13 = sadd.s32 4294967294, %s2353_s11  }
  0x16   : > { %3219 = sst [smem:[#allocation18_spill]] %s2337_s30  ;;  %p66_p0 = scmp.ne.s32.totalorder %s2329_s28, %s2325_s27 }
  0x17   : > { %3220 = sst [smem:[#allocation19_spill]] %s2345_s9  ;;  %p67_p1 = scmp.eq.s32.totalorder %s2462_s12, 0 }
  0x18   : > { %p161_p2 = scmp.ne.s32.totalorder %s2321_s26, %s2317_s25  ;;  %p3186_p3 = scmp.eq.s32.totalorder %s2462_s12, 3 }
  0x19   : > { %p2473_p4 = por %p67_p1, %p66_p0  ;;  %p167_p5 = scmp.ne.s32.totalorder %s2317_s25, %s2313_s24 }
  0x1a   : > { %p2481_p6 = por %p3186_p3, %p161_p2  ;;  %p168_p7 = scmp.eq.s32.totalorder %s1552_s13, 3 }
  0x1b   : > { %p1559_p8 = scmp.ge.s32.totalorder %s2353_s11, 1  ;;  %p257_p9 = scmp.lt.s32.totalorder %s2353_s11, 5 }
  0x1c   : > { %s3222_s15 = scalar_select %p2481_p6, 1, 0 }
  0x1d   : > { %p2487_p10 = por %p168_p7, %p167_p5  ;;  %p2491_p11 = por %p168_p7, %p66_p0 }
  0x1e   : > { %3223 = sst [smem:[#allocation20_spill]] %s3222_s15  ;;  %p2495_p12 = pnand %p1559_p8, %p257_p9 }
  0x1f   : > { %s3224_s16 = scalar_select %p2487_p10, 1, 0 }
  0x20   : > { %s3226_s17 = scalar_select %p2491_p11, 1, 0 }
  0x21   : > { %3225 = sst [smem:[#allocation21_spill]] %s3224_s16  ;;  %p1984_p13 = pneg %p2495_p12 }
  0x22   : > { %3227 = sst [smem:[#allocation22_spill]] %s3226_s17  ;;  %s2355_s19 = smov [#allocation7]  }
  0x23   : > { %s272_s20 = sshll.u32 %s2355_s19, 4  ;;  %p1985_p2 = pnand %p1984_p13, %p67_p1  ;;  %s273_s20 = int_to_ptr.vmem [resolvable:$true] %s272_s20 }
  0x24   : > { %s2124_s21 = scalar_lea.vmem %s273_s20, 2048  ;;  %p2132_p7 = scmp.lt.s32.totalorder %s273_s20, %s273_s20 }
  0x25   : > { %p2115_p5 = pneg %p1985_p2  ;;  %p2125_p3 = scmp.ne.s32.totalorder %s273_s20, %s2124_s21 }
  0x26   : > { %p2133_p6 = scmp.lt.s32.totalorder %s2124_s21, %s2124_s21 }
  0x27   : > { %p2127_p10 = pnand %p2125_p3, %p2115_p5 }
  0x28   : > { %p2134_p11 = por %p2133_p6, %p2132_p7 }
  0x29   : > { %p2128_p0 = pneg %p2127_p10 }
  0x2b   : > { %p2135_p8 = pnand %p2134_p11, %p2128_p0 }
  0x2d   : > { %2138 = shalt.err (!%p2135_p8)
}
  0x2e   : > { %s3192_s22 = smov 128   ;;  %s3193_s23 = smov 8  }
  0x2f   : > { %s3229_s3 = sld [smem:[#allocation35_spill]]  ;;  %s39_s21 = sadd.s32 1, %s2345_s9 }
  0x30   : > { %p40_p3 = scmp.ge.s32.totalorder %s39_s21, 2  ;;  %s42_s17 = sadd.s32 1, %s2349_s10 }
  0x31   : > { %s1553_s27 = sshll.u32 %s2349_s10, 1  ;;  %s53_s16 = sadd.s32 1, %s2333_s29 }
  0x32   : > { %s3286_s21 = smov (%p40_p3, %s39_s21), 0  ;;  %s3288_s17 = smov (!%p40_p3, %s42_s17), %s2349_s10 }
  0x33   : > { %3230 = sst [smem:[#allocation23_spill]] %s3286_s21  ;;  %s2517_s24 = sadd.s32 %s2345_s9, %s1553_s27 }
  0x34   : > { %p60_p6 = scmp.ne.s32.totalorder %s2333_s29, %s2329_s28  ;;  %p44_p9 = scmp.ge.s32.totalorder %s3288_s17, 2 }
  0x35   : > { %1987 = dma.hbm_to_vmem [thread:$0]  (!%p1985_p2), %s3229_s3, 2048, %s273_s20, [#allocation6], %s3192_s22, %s3192_s22, %s3193_s23  }
  0x36   : > { %p61_p10 = scmp.eq.s32.totalorder %s2353_s11, 0  ;;  %s151_s20 = sadd.s32 1, %s2321_s26 }
  0x37   : > { %p3231_p11 = scmp.eq.s32.totalorder %s2462_s12, 3  ;;  %s3290_s17 = smov (%p44_p9, %s3288_s17), 0 }
  0x38   : > { %3234 = sst [smem:[#allocation25_spill]] %s3290_s17  ;;  %p2531_p2 = por %p61_p10, %p60_p6 }
  0x39   : > { %p2525_p13 = por %p3231_p11, %p60_p6  ;;  %p2003_p5 = scmp.lt.s32.totalorder %s2353_s11, 4 }
  0x3a   : > { %s1554_s19 = sshll.u32 %s3290_s17, 1  ;;  %s148_s22 = ssub.s32 %s2349_s10, %s3290_s17 }
  0x3b   : > { %s3232_s13 = scalar_select %p2525_p13, 1, 0 }
  0x3c   : > { %s49_s23 = sadd.s32 %s1554_s19, %s3286_s21  ;;  %p149_p0 = scmp.eq.s32.totalorder %s148_s22, 0 }
  0x3d   : > { %3233 = sst [smem:[#allocation24_spill]] %s3232_s13  ;;  %s50_s3 = ssub.s32 %s2517_s24, %s49_s23 }
  0x3e   : > { %s2542_s9 = sand.u32 1, %s2333_s29   ;;  %p51_p7 = scmp.eq.s32.totalorder %s50_s3, 0 }
  0x3f   : > { %s2545_s4 = scalar_select %p149_p0, %s2321_s26, %s151_s20  }
  0x40   : > { %s2548_s15 = scalar_select %p51_p7, %s2333_s29, %s53_s16  }
  0x41   : > { %s1562_s5 = sshll.u32 %s2542_s9, 2  ;;  %s1591_s13 = sshll.u32 %s2517_s24, 6 }
  0x42   : > { %s3236_s0 = sld [smem:[#allocation33_spill]]  ;;  %s290_s17 = scalar_lea.vmem [#allocation2], %s1562_s5 }
  0x43   : > { %s300_s19 = sshll.u32 %s290_s17, 4  ;;  %p2559_p8 = pnand %p2003_p5, %p2531_p2  ;;  %s301_s19 = int_to_ptr.vmem [resolvable:$true] %s300_s19 }
  0x44   : > { %s1566_s3 = sshll.u32 %s2542_s9, 9  ;;  %s287_s16 = scalar_lea.sflag [#allocation3], %s2542_s9 }
  0x45   : > { %p2141_p3 = pneg %p2559_p8  ;;  %s2152_s23 = scalar_lea.vmem %s301_s19, 64 }
  0x46   : > { %p2153_p6 = scmp.ne.s32.totalorder %s301_s19, %s2152_s23  ;;  %s2358_s2 = smov [#allocation2]  }
  0x47   : > { %s2157_s5 = sshll.u32 %s2358_s2, 4  ;;  %s2158_s5 = int_to_ptr.vmem [resolvable:$false] %s2157_s5 }
  0x48   : > { %s298_s7 = scalar_lea.hbm %s3236_s0, %s1591_s13  ;;  %p2155_p9 = pnand %p2153_p6, %p2141_p3 }
  0x49   : > { %s2159_s30 = scalar_lea.vmem %s2158_s5, 128  ;;  %p2160_p11 = scmp.lt.s32.totalorder %s301_s19, %s2158_s5 }
  0x4a   : > { %p2156_p10 = pneg %p2155_p9  ;;  %p2161_p2 = scmp.lt.s32.totalorder %s2159_s30, %s2152_s23 }
  0x4c   : > { %p2162_p5 = por %p2161_p2, %p2160_p11 }
  0x4e   : > { %p2163_p0 = pnand %p2162_p5, %p2156_p10 }
  0x50   : > { %2166 = shalt.err (!%p2163_p0)
}
  0x51   : > { %1991 = dma.hbm_to_vmem [thread:$0]  (!%p2559_p8), %s298_s7, 64, %s301_s19, %s287_s16  }
  0x52   : > { %s1592_s9 = sshll.u32 %s2517_s24, 13  ;;  %s311_s17 = scalar_lea.vmem [#allocation5], %s1566_s3 }
  0x53   : > { %s320_s20 = sshll.u32 %s311_s17, 4  ;;  %s319_s2 = scalar_lea.hbm %s3179_s1, %s1592_s9  ;;  %s321_s20 = int_to_ptr.vmem [resolvable:$true] %s320_s20 }
  0x54   : > { %s307_s0 = sand.u32 1, %s2353_s11   ;;  %s2180_s23 = scalar_lea.vmem %s321_s20, 8192 }
  0x55   : > { %s308_s5 = scalar_lea.sflag [#allocation6], %s307_s0  ;;  %p2181_p7 = scmp.ne.s32.totalorder %s321_s20, %s2180_s23 }
  0x56   : > { %s2359_s30 = smov [#allocation5]  }
  0x57   : > { %p2183_p6 = pnand %p2181_p7, %p2141_p3  ;;  %s2185_s21 = sshll.u32 %s2359_s30, 4  ;;  %s2186_s21 = int_to_ptr.vmem [resolvable:$false] %s2185_s21 }
  0x58   : > { %s2187_s7 = scalar_lea.vmem %s2186_s21, 16384  ;;  %p2188_p10 = scmp.lt.s32.totalorder %s321_s20, %s2186_s21 }
  0x59   : > { %p2184_p9 = pneg %p2183_p6  ;;  %p2189_p11 = scmp.lt.s32.totalorder %s2187_s7, %s2180_s23 }
  0x5b   : > { %p2190_p2 = por %p2189_p11, %p2188_p10 }
  0x5d   : > { %p2191_p5 = pnand %p2190_p2, %p2184_p9 }
  0x5f   : > { %2194 = shalt.err (!%p2191_p5)
}
  0x60   : > { %s3238_s24 = smov 8   ;;  %s3239_s19 = smov 128  }
  0x61   : > { %1994 = dma.hbm_to_vmem [thread:$0]  (!%p2559_p8), %s319_s2, 8192, %s321_s20, %s308_s5, %s3239_s19, %s3239_s19, %s3238_s24  }
  0x62   : > { %332 = sbr.rel (%p2495_p12) target bundleno = 931 (0x3a3), region = 36 }
  0x67   : > { %s2588_s0 = sand.u32 1, %s2329_s28  }
  0x68   : > { %s1571_s21 = sshll.u32 %s2588_s0, 2  ;;  %s335_s3 = scalar_lea.sflag [#allocation3], %s2588_s0 }
  0x69   : > { %s2592_s16 = scalar_lea.vmem [#allocation2], %s1571_s21 }
  0x6a   : > { %2292 = dma.done.wait (%p2473_p4), %s335_s3, 64  }
  0x6b   : > { %2294 = vsyncadd (%p2473_p4), %s335_s3, 4294967232  ;;  %s343_s18 = sand.u32 1, %s2462_s12   ;;  %s1572_s22 = sshll.u32 %s2588_s0, 9 }
  0x6c   : > { %s344_s9 = scalar_lea.sflag [#allocation6], %s343_s18  ;;  %s2600_s17 = scalar_lea.vmem [#allocation5], %s1572_s22 }
  0x6d   : > { %2296 = dma.done.wait (%p2473_p4), %s344_s9, 8192  }
  0x6e   : > { %2298 = vsyncadd (%p2473_p4), %s344_s9, 4294959104 }
  0x6f   : > { %2300 = dma.done.wait (%p67_p1), [#allocation6], 2048  }
  0x70   : > { %2302 = vsyncadd (%p67_p1), [#allocation6], 4294965248  ;;  %s3210_s20 = sand.u32 1, %s2317_s25   ;;  %p409_p12 = scmp.lt.s32.totalorder %s2341_s8, 1 }
  0x71   : > { %s1574_s13 = sshll.u32 %s3210_s20, 3  ;;  %s3240_s24 = sld [smem:[#allocation38_spill]] }
  0x72   : > { %s410_s27 = scalar_select %p409_p12, %s2341_s8, 1 }
  0x73   : > { %s2625_s19 = scalar_lea.vmem [#allocation8], %s1574_s13  ;;  %s2627_s3 = scalar_lea.vmem [#allocation9], %s1571_s21 }
  0x74   : > { %s1576_s2 = sshll.u32 %s410_s27, 3  ;;  %s3241_s18 = sld [smem:[#allocation18_spill]] }
  0x75   : > { %s2618_s14 = scalar_lea.vmem %s3184_s6, %s1576_s2 }
  0x77   : > { %s2623_s12 = scalar_lea.vmem %s3240_s24, %s1576_s2 }
  0x7a   : > { %p1578_p1 = scmp.ne.s32.totalorder %s3241_s18, 0 }
  0x7c   : > { %420 = sbr.rel (%p1578_p1) target bundleno = 132 (0x84), region = 52 }
  0x81   : > { %vm422_vm0 = vcmask 7168   ;;  %v2360_v0 = vmov 0.0   ;;  %v2361_v1 = vmov -inf  }
  0x82   : > { %421 = vst [vmem:[%s2625_s19] sm:$0xff] %v2360_v0  ;;  %423 = vst.msk [vmem:[%s2618_s14] sm:$0xff] %vm422_vm0, %v2361_v1 }
  0x83   : > { %424 = vst.msk [vmem:[%s2623_s12] sm:$0xff] %vm422_vm0, %v2360_v0 }
  0x84 PF: > { %v2634_v2 = vld [vmem:[%s2600_s17 + $0xf8] sm:$0xff]  ;;  %v2648_v6 = vld [vmem:[%s2600_s17 + $0xf0] sm:$0xff]  ;;  %v2664_v10 = vld [vmem:[%s2600_s17 + $0xe8] sm:$0xff]  ;;  %s3242_s9 = sld [smem:[#allocation34_spill]]  ;;  %vm1151_vm6 = vcmask 7168   ;;  %s1586_s13 = sshll.u32 %s2341_s8, 1 }
  0x85   : > { %v2637_v3 = vld [vmem:[%s2600_s17 + $0x1f8] sm:$0xff]  ;;  %1594 = vmatprep.subr.mxu0 %v2634_v2  ;;  %v2651_v7 = vld [vmem:[%s2600_s17 + $0x1f0] sm:$0xff]  ;;  %v2667_v11 = vld [vmem:[%s2600_s17 + $0x1e8] sm:$0xff]  ;;  %s1346_s5 = sshll.u32 %s2627_s3, 4  ;;  %s3261_s30 = sld [smem:[#allocation37_spill]]  ;;  %s1347_s5 = int_to_ptr.vmem [resolvable:$true] %s1346_s5 }
  0x86   : > { %v2640_v4 = vld [vmem:[%s2600_s17 + $0x78] sm:$0xff]  ;;  %1628 = vmatprep.subr.mxu1 %v2637_v3  ;;  %v2658_v8 = vld [vmem:[%s2600_s17 + $0x70] sm:$0xff]  ;;  %v2674_v12 = vld [vmem:[%s2600_s17 + $0x68] sm:$0xff]  ;;  %s1309_s18 = scalar_lea.sflag [#allocation10], %s2588_s0  ;;  %s2195_s21 = scalar_lea.vmem %s1347_s5, 64 }
  0x87   : > { %v2645_v5 = vld [vmem:[%s2600_s17 + $0x178] sm:$0xff]  ;;  %1595 = vmatpush3.xpose.msra.mxu0 %v2640_v4  ;;  %v2661_v9 = vld [vmem:[%s2600_s17 + $0x170] sm:$0xff]  ;;  %v2677_v13 = vld [vmem:[%s2600_s17 + $0x168] sm:$0xff]  ;;  %p2196_p4 = scmp.ne.s32.totalorder %s1347_s5, %s2195_s21  ;;  %s2364_s22 = smov [#allocation9]  }
  0x88   : > { %1629 = vmatpush3.xpose.msra.mxu1 %v2645_v5  ;;  %1596 = vmatprep.subr.mxu0 %v2648_v6  ;;  %v2680_v14 = vld [vmem:[%s2600_s17 + $0xe0] sm:$0xff]  ;;  %v2696_v18 = vld [vmem:[%s2600_s17 + $0xd8] sm:$0xff]  ;;  %v2712_v22 = vld [vmem:[%s2600_s17 + $0xd0] sm:$0xff] }
  0x89   : > { %1630 = vmatprep.subr.mxu1 %v2651_v7  ;;  %v2683_v15 = vld [vmem:[%s2600_s17 + $0x1e0] sm:$0xff]  ;;  %v2699_v19 = vld [vmem:[%s2600_s17 + $0x1d8] sm:$0xff]  ;;  %v2715_v23 = vld [vmem:[%s2600_s17 + $0x1d0] sm:$0xff]  ;;  %p2197_p8 = pnand %p2196_p4, %p2525_p13 }
  0x8a   : > { %v2690_v16 = vld [vmem:[%s2600_s17 + $0x60] sm:$0xff]  ;;  %v2706_v20 = vld [vmem:[%s2600_s17 + $0x58] sm:$0xff]  ;;  %v2722_v24 = vld [vmem:[%s2600_s17 + $0x50] sm:$0xff] }
  0x8b   : > { %1597 = vmatpush3.xpose.msra.mxu0 %v2658_v8  ;;  %v2693_v17 = vld [vmem:[%s2600_s17 + $0x160] sm:$0xff]  ;;  %v2709_v21 = vld [vmem:[%s2600_s17 + $0x158] sm:$0xff]  ;;  %v2725_v25 = vld [vmem:[%s2600_s17 + $0x150] sm:$0xff]  ;;  %s3262_s7 = smov %s3261_s30  ;;  %p2198_p3 = pneg %p2197_p8 }
  0x8c   : > { %1631 = vmatpush3.xpose.msra.mxu1 %v2661_v9  ;;  %1598 = vmatprep.subr.mxu0 %v2664_v10  ;;  %v2728_v26 = vld [vmem:[%s2600_s17 + $0xc8] sm:$0xff]  ;;  %v2736_v28 = vld [vmem:[%s3242_s9] sm:$0x1]  ;;  %v2749_v31 = vld [vmem:[%s2600_s17 + $0xc0] sm:$0xff]  ;;  %s2199_s9 = sshll.u32 %s2364_s22, 4  ;;  %s2200_s9 = int_to_ptr.vmem [resolvable:$false] %s2199_s9 }
  0x8d   : > { %1632 = vmatprep.subr.mxu1 %v2667_v11  ;;  %v2731_v27 = vld [vmem:[%s2600_s17 + $0x1c8] sm:$0xff]  ;;  %v2752_v32 = vld [vmem:[%s2600_s17 + $0x1c0] sm:$0xff]  ;;  %1626 = vmatprep.mubr.f32.mxu0 %v2736_v28  ;;  %v2767_v35 = vld [vmem:[%s2600_s17 + $0xb8] sm:$0xff]  ;;  %s2201_s20 = scalar_lea.vmem %s2200_s9, 128  ;;  %p2202_p0 = scmp.lt.s32.totalorder %s1347_s5, %s2200_s9 }
  0x8e   : > { %v2743_v29 = vld [vmem:[%s2600_s17 + $0x48] sm:$0xff]  ;;  %1660 = vmatprep.mubr.f32.mxu1 %v2736_v28  ;;  %v2761_v33 = vld [vmem:[%s2600_s17 + $0x40] sm:$0xff]  ;;  %v2770_v36 = vld [vmem:[%s2600_s17 + $0x1b8] sm:$0xff]  ;;  %p2203_p7 = scmp.lt.s32.totalorder %s2201_s20, %s2195_s21 }
  0x8f   : > { %1599 = vmatpush3.xpose.msra.mxu0 %v2674_v12  ;;  %v2746_v30 = vld [vmem:[%s2600_s17 + $0x148] sm:$0xff]  ;;  %v2764_v34 = vld [vmem:[%s2600_s17 + $0x140] sm:$0xff]  ;;  %v2777_v37 = vld [vmem:[%s2600_s17 + $0x38] sm:$0xff] }
  0x90   : > { %1633 = vmatpush3.xpose.msra.mxu1 %v2677_v13  ;;  %1600 = vmatprep.subr.mxu0 %v2680_v14  ;;  %3243 = vst [vmem:[#allocation26_spill] sm:$0xff] %v2746_v30  ;;  %3244 = vst [vmem:[#allocation27_spill] sm:$0xff] %v2764_v34  ;;  %v2780_v38 = vld [vmem:[%s2600_s17 + $0x138] sm:$0xff]  ;;  %v2783_v39 = vld [vmem:[%s2600_s17 + $0xb0] sm:$0xff]  ;;  %p2204_p6 = por %p2203_p7, %p2202_p0 }
  0x91   : > { %1634 = vmatprep.subr.mxu1 %v2683_v15  ;;  %3245 = vst [vmem:[#allocation28_spill] sm:$0xff] %v2780_v38  ;;  %v2786_v40 = vld [vmem:[%s2600_s17 + $0x1b0] sm:$0xff]  ;;  %v2799_v43 = vld [vmem:[%s2600_s17 + $0xa8] sm:$0xff]  ;;  %v2815_v47 = vld [vmem:[%s2600_s17 + $0xa0] sm:$0xff] }
  0x92   : > { %v2793_v41 = vld [vmem:[%s2600_s17 + $0x30] sm:$0xff]  ;;  %v2802_v44 = vld [vmem:[%s2600_s17 + $0x1a8] sm:$0xff]  ;;  %v2818_v48 = vld [vmem:[%s2600_s17 + $0x1a0] sm:$0xff]  ;;  %p2205_p9 = pnand %p2204_p6, %p2198_p3 }
  0x93   : > { %1601 = vmatpush3.xpose.msra.mxu0 %v2690_v16  ;;  %v2796_v42 = vld [vmem:[%s2600_s17 + $0x130] sm:$0xff]  ;;  %v2809_v45 = vld [vmem:[%s2600_s17 + $0x28] sm:$0xff]  ;;  %v2825_v49 = vld [vmem:[%s2600_s17 + $0x20] sm:$0xff] }
  0x94   : > { %1635 = vmatpush3.xpose.msra.mxu1 %v2693_v17  ;;  %1602 = vmatprep.subr.mxu0 %v2696_v18  ;;  %3246 = vst [vmem:[#allocation29_spill] sm:$0xff] %v2796_v42  ;;  %v2812_v46 = vld [vmem:[%s2600_s17 + $0x128] sm:$0xff]  ;;  %v2828_v50 = vld [vmem:[%s2600_s17 + $0x120] sm:$0xff]  ;;  %v2831_v51 = vld [vmem:[%s2600_s17 + $0x98] sm:$0xff] }
  0x95   : > { %1636 = vmatprep.subr.mxu1 %v2699_v19  ;;  %3247 = vst [vmem:[#allocation30_spill] sm:$0xff] %v2812_v46  ;;  %3248 = vst [vmem:[#allocation31_spill] sm:$0xff] %v2828_v50  ;;  %v2834_v52 = vld [vmem:[%s2600_s17 + $0x198] sm:$0xff]  ;;  %v2847_v55 = vld [vmem:[%s2600_s17 + $0x90] sm:$0xff] }
  0x96   : > { %v2841_v53 = vld [vmem:[%s2600_s17 + $0x18] sm:$0xff]  ;;  %v2850_v56 = vld [vmem:[%s2600_s17 + $0x190] sm:$0xff]  ;;  %v2863_v59 = vld [vmem:[%s2600_s17 + $0x88] sm:$0xff] }
  0x97   : > { %1603 = vmatpush3.xpose.msra.mxu0 %v2706_v20  ;;  %v2844_v54 = vld [vmem:[%s2600_s17 + $0x118] sm:$0xff]  ;;  %v2857_v57 = vld [vmem:[%s2600_s17 + $0x10] sm:$0xff]  ;;  %v2866_v60 = vld [vmem:[%s2600_s17 + $0x188] sm:$0xff] }
  0x98   : > { %1637 = vmatpush3.xpose.msra.mxu1 %v2709_v21  ;;  %1604 = vmatprep.subr.mxu0 %v2712_v22  ;;  %3249 = vst [vmem:[#allocation32_spill] sm:$0xff] %v2844_v54  ;;  %v2860_v58 = vld [vmem:[%s2600_s17 + $0x110] sm:$0xff]  ;;  %v2873_v61 = vld [vmem:[%s2600_s17 + $0x8] sm:$0xff]  ;;  %v2879_v63 = vld [vmem:[%s2600_s17 + $0x80] sm:$0xff] }
  0x99   : > { %1638 = vmatprep.subr.mxu1 %v2715_v23  ;;  %v2876_v62 = vld [vmem:[%s2600_s17 + $0x108] sm:$0xff]  ;;  %v2882_v0 = vld [vmem:[%s2600_s17 + $0x180] sm:$0xff] }
  0x9a   : > { %v425_v1 = vld [vmem:[%s2600_s17] sm:$0xff] }
  0x9b   : > { %1605 = vmatpush3.xpose.msra.mxu0 %v2722_v24 }
  0x9c   : > { %1639 = vmatpush3.xpose.msra.mxu1 %v2725_v25  ;;  %1606 = vmatprep.subr.mxu0 %v2728_v26 }
  0x9d   : > { %1640 = vmatprep.subr.mxu1 %v2731_v27 }
  0x9f   : > { %1607 = vmatpush3.xpose.msra.mxu0 %v2743_v29 }
  0xa0   : > { %1641 = vmatpush3.xpose.msra.mxu1 %v2746_v30  ;;  %1608 = vmatprep.subr.mxu0 %v2749_v31  ;;  %v2890_v30 = vld [vmem:[%s2600_s17 + $0x100] sm:$0xff] }
  0xa1   : > { %1642 = vmatprep.subr.mxu1 %v2752_v32 }
  0xa3   : > { %1609 = vmatpush3.xpose.msra.mxu0 %v2761_v33 }
  0xa4   : > { %1643 = vmatpush3.xpose.msra.mxu1 %v2764_v34  ;;  %1610 = vmatprep.subr.mxu0 %v2767_v35  ;;  %v681_v34 = vld [vmem:[#allocation7 + $0x78] sm:$0xff] }
  0xa5   : > { %1644 = vmatprep.subr.mxu1 %v2770_v36 }
  0xa7   : > { %1611 = vmatpush3.xpose.msra.mxu0 %v2777_v37 }
  0xa8   : > { %1645 = vmatpush3.xpose.msra.mxu1 %v2780_v38  ;;  %1612 = vmatprep.subr.mxu0 %v2783_v39  ;;  %v680_v38 = vld [vmem:[#allocation7 + $0x70] sm:$0xff] }
  0xa9   : > { %1646 = vmatprep.subr.mxu1 %v2786_v40 }
  0xab   : > { %1613 = vmatpush3.xpose.msra.mxu0 %v2793_v41 }
  0xac   : > { %1647 = vmatpush3.xpose.msra.mxu1 %v2796_v42  ;;  %1614 = vmatprep.subr.mxu0 %v2799_v43  ;;  %v679_v42 = vld [vmem:[#allocation7 + $0x68] sm:$0xff] }
  0xad   : > { %1648 = vmatprep.subr.mxu1 %v2802_v44 }
  0xaf   : > { %1615 = vmatpush3.xpose.msra.mxu0 %v2809_v45 }
  0xb0   : > { %1649 = vmatpush3.xpose.msra.mxu1 %v2812_v46  ;;  %1616 = vmatprep.subr.mxu0 %v2815_v47  ;;  %v678_v46 = vld [vmem:[#allocation7 + $0x60] sm:$0xff] }
  0xb1   : > { %1650 = vmatprep.subr.mxu1 %v2818_v48 }
  0xb3   : > { %1617 = vmatpush3.xpose.msra.mxu0 %v2825_v49 }
  0xb4   : > { %1651 = vmatpush3.xpose.msra.mxu1 %v2828_v50  ;;  %1618 = vmatprep.subr.mxu0 %v2831_v51  ;;  %v677_v50 = vld [vmem:[#allocation7 + $0x58] sm:$0xff] }
  0xb5   : > { %1652 = vmatprep.subr.mxu1 %v2834_v52 }
  0xb7   : > { %1619 = vmatpush3.xpose.msra.mxu0 %v2841_v53 }
  0xb8   : > { %1653 = vmatpush3.xpose.msra.mxu1 %v2844_v54  ;;  %1620 = vmatprep.subr.mxu0 %v2847_v55  ;;  %v676_v54 = vld [vmem:[#allocation7 + $0x50] sm:$0xff] }
  0xb9   : > { %1654 = vmatprep.subr.mxu1 %v2850_v56 }
  0xbb   : > { %1621 = vmatpush3.xpose.msra.mxu0 %v2857_v57 }
  0xbc   : > { %1655 = vmatpush3.xpose.msra.mxu1 %v2860_v58  ;;  %1622 = vmatprep.subr.mxu0 %v2863_v59 }
  0xbd   : > { %1656 = vmatprep.subr.mxu1 %v2866_v60 }
  0xbf   : > { %1623 = vmatpush3.xpose.msra.mxu0 %v2873_v61 }
  0xc0   : > { %1657 = vmatpush3.xpose.msra.mxu1 %v2876_v62  ;;  %1624 = vmatprep.subr.mxu0 %v2879_v63 }
  0xc1   : > { %1658 = vmatprep.subr.mxu1 %v2882_v0 }
  0xc3   : > { %1625 = vmatpush3.xpose.msra.mxu0 %v425_v1 }
  0xc4   : > { %1659 = vmatpush3.xpose.msra.mxu1 %v2890_v30  ;;  %1812 = vmatprep.subr.mxu0 %v681_v34 }
  0xc5   : > { %1940 = vmatprep.subr.mxu1 %v681_v34 }
  0xc6   : > { %1627 = vmatmul.mubr.f32.vlgmr.msra.gmra.mxu0 %v2736_v28 }
  0xc7   : > { %1661 = vmatmul.mubr.f32.vlgmr.msra.gmra.mxu1 %v2736_v28  ;;  %1813 = vmatpush3.msra.mxu0 %v681_v34  ;;  %v675_v28 = vld [vmem:[#allocation7 + $0x48] sm:$0xff] }
  0xc8   : > { %1844 = vmatprep.mubr.f32.mxu0 %v425_v1  ;;  %1814 = vmatprep.subr.mxu0 %v680_v38  ;;  %v668_v1 = vld [vmem:[#allocation7 + $0x10] sm:$0xff] }
  0xc9   : > { %1956 = vmatpush3.msra.mxu1 %v681_v34  ;;  %1815 = vmatpush3.msra.mxu0 %v680_v38  ;;  %v674_v34 = vld [vmem:[#allocation7 + $0x40] sm:$0xff] }
  0xca   : > { %1941 = vmatprep.subr.mxu1 %v680_v38  ;;  %1816 = vmatprep.subr.mxu0 %v679_v42 }
  0xcb   : > { %1957 = vmatpush3.msra.mxu1 %v680_v38  ;;  %1817 = vmatpush3.msra.mxu0 %v679_v42  ;;  %v673_v38 = vld [vmem:[#allocation7 + $0x38] sm:$0xff] }
  0xcc   : > { %1942 = vmatprep.subr.mxu1 %v679_v42  ;;  %1818 = vmatprep.subr.mxu0 %v678_v46 }
  0xcd   : > { %1958 = vmatpush3.msra.mxu1 %v679_v42  ;;  %1819 = vmatpush3.msra.mxu0 %v678_v46  ;;  %v672_v42 = vld [vmem:[#allocation7 + $0x30] sm:$0xff] }
  0xce   : > { %1943 = vmatprep.subr.mxu1 %v678_v46  ;;  %1820 = vmatprep.subr.mxu0 %v677_v50 }
  0xcf   : > { %1959 = vmatpush3.msra.mxu1 %v678_v46  ;;  %1821 = vmatpush3.msra.mxu0 %v677_v50  ;;  %v671_v46 = vld [vmem:[#allocation7 + $0x28] sm:$0xff] }
  0xd0   : > { %1944 = vmatprep.subr.mxu1 %v677_v50  ;;  %1822 = vmatprep.subr.mxu0 %v676_v54 }
  0xd1   : > { %1960 = vmatpush3.msra.mxu1 %v677_v50  ;;  %1823 = vmatpush3.msra.mxu0 %v676_v54  ;;  %v670_v50 = vld [vmem:[#allocation7 + $0x20] sm:$0xff] }
  0xd2   : > { %1945 = vmatprep.subr.mxu1 %v676_v54  ;;  %1824 = vmatprep.subr.mxu0 %v675_v28 }
  0xd3   : > { %1961 = vmatpush3.msra.mxu1 %v676_v54  ;;  %1825 = vmatpush3.msra.mxu0 %v675_v28  ;;  %v669_v54 = vld [vmem:[#allocation7 + $0x18] sm:$0xff] }
  0xd4   : > { %1946 = vmatprep.subr.mxu1 %v675_v28  ;;  %1826 = vmatprep.subr.mxu0 %v674_v34 }
  0xd5   : > { %1962 = vmatpush3.msra.mxu1 %v675_v28  ;;  %1827 = vmatpush3.msra.mxu0 %v674_v34  ;;  %v667_v28 = vld [vmem:[#allocation7 + $0x8] sm:$0xff] }
  0xd6   : > { %1947 = vmatprep.subr.mxu1 %v674_v34  ;;  %1828 = vmatprep.subr.mxu0 %v673_v38 }
  0xd7   : > { %1963 = vmatpush3.msra.mxu1 %v674_v34  ;;  %1829 = vmatpush3.msra.mxu0 %v673_v38  ;;  %v666_v34 = vld [vmem:[#allocation7] sm:$0xff] }
  0xd8   : > { %1948 = vmatprep.subr.mxu1 %v673_v38  ;;  %1830 = vmatprep.subr.mxu0 %v672_v42 }
  0xd9   : > { %1964 = vmatpush3.msra.mxu1 %v673_v38  ;;  %1831 = vmatpush3.msra.mxu0 %v672_v42 }
  0xda   : > { %1949 = vmatprep.subr.mxu1 %v672_v42  ;;  %1832 = vmatprep.subr.mxu0 %v671_v46 }
  0xdb   : > { %1965 = vmatpush3.msra.mxu1 %v672_v42  ;;  %1833 = vmatpush3.msra.mxu0 %v671_v46 }
  0xdc   : > { %1950 = vmatprep.subr.mxu1 %v671_v46  ;;  %1834 = vmatprep.subr.mxu0 %v670_v50 }
  0xdd   : > { %1966 = vmatpush3.msra.mxu1 %v671_v46  ;;  %1835 = vmatpush3.msra.mxu0 %v670_v50 }
  0xde   : > { %1951 = vmatprep.subr.mxu1 %v670_v50  ;;  %1836 = vmatprep.subr.mxu0 %v669_v54 }
  0xdf   : > { %1967 = vmatpush3.msra.mxu1 %v670_v50  ;;  %1837 = vmatpush3.msra.mxu0 %v669_v54 }
  0xe0   : > { %1952 = vmatprep.subr.mxu1 %v669_v54  ;;  %1838 = vmatprep.subr.mxu0 %v668_v1 }
  0xe1   : > { %1968 = vmatpush3.msra.mxu1 %v669_v54  ;;  %1839 = vmatpush3.msra.mxu0 %v668_v1 }
  0xe2   : > { %1953 = vmatprep.subr.mxu1 %v668_v1  ;;  %1840 = vmatprep.subr.mxu0 %v667_v28 }
  0xe3   : > { %1969 = vmatpush3.msra.mxu1 %v668_v1  ;;  %1841 = vmatpush3.msra.mxu0 %v667_v28 }
  0xe4   : > { %1954 = vmatprep.subr.mxu1 %v667_v28  ;;  %1842 = vmatprep.subr.mxu0 %v666_v34 }
  0xe5   : > { %1970 = vmatpush3.msra.mxu1 %v667_v28  ;;  %1843 = vmatpush3.msra.mxu0 %v666_v34 }
  0xe6   : > { %1955 = vmatprep.subr.mxu1 %v666_v34  ;;  %1845 = vmatmul.mubr.f32.vlgmr.msra.gmra.mxu0 %v2873_v61 }
  0xe7   : > { %1971 = vmatpush3.msra.mxu1 %v666_v34  ;;  %1847 = vmatprep.mubr.f32.mxu0 %v2857_v57 }
  0xe8   : > { %1907 = vmatprep.mubr.f32.mxu1 %v2725_v25 }
  0xe9   : > { %1908 = vmatmul.mubr.f32.vlgmr.msra.gmra.mxu1 %v2709_v21 }
  0xea   : > { %1910 = vmatprep.mubr.f32.mxu1 %v2693_v17  ;;  %1848 = vmatmul.mubr.f32.gmra.mxu0 %v2841_v53 }
  0xeb   : > { %1850 = vmatprep.mubr.f32.mxu0 %v2825_v49 }
  0xed   : > { %1911 = vmatmul.mubr.f32.gmra.mxu1 %v2677_v13 }
  0xee   : > { %1913 = vmatprep.mubr.f32.mxu1 %v2661_v9  ;;  %1851 = vmatmul.mubr.f32.gmra.mxu0 %v2809_v45  ;;  %v641_v9 = vlaneseq }
  0xef   : > { %1853 = vmatprep.mubr.f32.mxu0 %v2793_v41 }
  0xf0   : > { %vm663_vm5 = vcmp.lt.s32.totalorder %v641_v9, 512 }
  0xf1   : > { %1914 = vmatmul.mubr.f32.gmra.mxu1 %v2645_v5  ;;  %v3252_v5 = vld [vmem:[#allocation30_spill] sm:$0xff] }
  0xf2   : > { %1916 = vmatprep.mubr.f32.mxu1 %v2882_v0  ;;  %1854 = vmatmul.mubr.f32.gmra.mxu0 %v2777_v37 }
  0xf3   : > { %1856 = vmatprep.mubr.f32.mxu0 %v2761_v33 }
  0xf5   : > { %1917 = vmatmul.mubr.f32.gmra.mxu1 %v2866_v60 }
  0xf6   : > { %1919 = vmatprep.mubr.f32.mxu1 %v2850_v56  ;;  %1857 = vmatmul.mubr.f32.gmra.mxu0 %v2743_v29 }
  0xf7   : > { %1859 = vmatprep.mubr.f32.mxu0 %v2722_v24 }
  0xf9   : > { %1920 = vmatmul.mubr.f32.gmra.mxu1 %v2834_v52  ;;  %v2363_v52 = vmov 0  }
  0xfa   : > { %1922 = vmatprep.mubr.f32.mxu1 %v2818_v48  ;;  %1860 = vmatmul.mubr.f32.gmra.mxu0 %v2706_v20 }
  0xfb   : > { %1862 = vmatprep.mubr.f32.mxu0 %v2690_v16  ;;  %2101 = vset.pattern.permute.xlu0 %v2363_v52 }
  0xfc   : > { %2102 = vset.pattern.permute.xlu1 %v2363_v52 }
  0xfd   : > { %1923 = vmatmul.mubr.f32.gmra.mxu1 %v2802_v44 }
  0xfe   : > { %1925 = vmatprep.mubr.f32.mxu1 %v2786_v40  ;;  %1863 = vmatmul.mubr.f32.gmra.mxu0 %v2674_v12  ;;  %v2362_v12 = vmov 1966171168  }
  0xff   : > { %1865 = vmatprep.mubr.f32.mxu0 %v2658_v8  ;;  %v3254_v8 = vld [vmem:[#allocation28_spill] sm:$0xff]  ;;  %v639_v13 = vunpack.c.l.s4 %v2362_v12 }
 0x101   : > { %1926 = vmatmul.mubr.f32.gmra.mxu1 %v2770_v36 }
 0x102   : > { %1928 = vmatprep.mubr.f32.mxu1 %v2752_v32  ;;  %1866 = vmatmul.mubr.f32.gmra.mxu0 %v2640_v4  ;;  %v3251_v4 = vld [vmem:[#allocation31_spill] sm:$0xff] }
 0x103   : > { %1868 = vmatprep.mubr.f32.mxu0 %v2879_v63 }
 0x105   : > { %1929 = vmatmul.mubr.f32.gmra.mxu1 %v2731_v27 }
 0x106   : > { %1931 = vmatprep.mubr.f32.mxu1 %v2715_v23  ;;  %1869 = vmatmul.mubr.f32.gmra.mxu0 %v2863_v59 }
 0x107   : > { %1871 = vmatprep.mubr.f32.mxu0 %v2847_v55 }
 0x109   : > { %1932 = vmatmul.mubr.f32.gmra.mxu1 %v2699_v19  ;;  %v640_v19 = vunpack.c.0.s8 %v639_v13 }
 0x10a   : > { %1934 = vmatprep.mubr.f32.mxu1 %v2683_v15  ;;  %1872 = vmatmul.mubr.f32.gmra.mxu0 %v2831_v51 }
 0x10b   : > { %1874 = vmatprep.mubr.f32.mxu0 %v2815_v47 }
 0x10d   : > { %1935 = vmatmul.mubr.f32.gmra.mxu1 %v2667_v11 }
 0x10e   : > { %1937 = vmatprep.mubr.f32.mxu1 %v2651_v7  ;;  %1875 = vmatmul.mubr.f32.gmra.mxu0 %v2799_v43  ;;  %v3253_v7 = vld [vmem:[#allocation29_spill] sm:$0xff] }
 0x10f   : > { %1877 = vmatprep.mubr.f32.mxu0 %v2783_v39 }
 0x111   : > { %1938 = vmatmul.mubr.f32.gmra.mxu1 %v2637_v3  ;;  %v3250_v3 = vld [vmem:[#allocation32_spill] sm:$0xff] }
 0x112   : > { %1878 = vmatmul.mubr.f32.gmra.mxu0 %v2767_v35 }
 0x113   : > { %1880 = vmatprep.mubr.f32.mxu0 %v2749_v31 }
 0x116   : > { %1881 = vmatmul.mubr.f32.gmra.mxu0 %v2728_v26 }
 0x117   : > { %1883 = vmatprep.mubr.f32.mxu0 %v2712_v22 }
 0x11a   : > { %1884 = vmatmul.mubr.f32.gmra.mxu0 %v2696_v18 }
 0x11b   : > { %1886 = vmatprep.mubr.f32.mxu0 %v2680_v14  ;;  %v1070_v14 = vld [vmem:[%s2592_s16] sm:$0xf]  ;;  %s3259_s16 = sld [smem:[#allocation18_spill]] }
 0x11e   : > { %1887 = vmatmul.mubr.f32.gmra.mxu0 %v2664_v10  ;;  %v2958_v10 = vshrl.u32 %v641_v9, 7 }
 0x11f   : > { %1889 = vmatprep.mubr.f32.mxu0 %v2648_v6  ;;  %v3255_v6 = vld [vmem:[#allocation27_spill] sm:$0xff] }
 0x120   : > { %v1073_v11 = vsub.s32 0, %v2958_v10  ;;  %v1081_v15 = vsub.s32 2, %v2958_v10  ;;  %v1077_v16 = vsub.s32 1, %v2958_v10  ;;  %v1085_v17 = vsub.s32 3, %v2958_v10 }
 0x121   : > { %v643_v29 = vsub.s32 %v640_v19, %v2958_v10  ;;  %s1338_s27 = sadd.s32 %s3259_s16, %s1586_s13 }
 0x122   : > { %1890 = vmatmul.mubr.f32.gmra.mxu0 %v2634_v2  ;;  %v3256_v2 = vld [vmem:[#allocation26_spill] sm:$0xff]  ;;  %v1074_v18 = vrot.slane %v1070_v14, %v1073_v11  ;;  %v2965_v20 = vrot.slane %v1070_v14, %v1081_v15  ;;  %v2967_v21 = vrot.slane %v1070_v14, %v1077_v16  ;;  %v2969_v22 = vrot.slane %v1070_v14, %v1085_v17  ;;  %s1593_s2 = sshll.u32 %s1338_s27, 6 }
 0x123   : > { %1892 = vmatprep.mubr.f32.mxu0 %v2890_v30  ;;  %s1344_s24 = scalar_lea.hbm %s3261_s30, %s1593_s2 }
 0x124   : > { %vm2972_vm1 = vcmp.eq.s32.totalorder %v2958_v10, %v1074_v18  ;;  %vm1089_vm2 = vcmp.eq.s32.totalorder %v2958_v10, %v2965_v20  ;;  %vm1088_vm3 = vcmp.eq.s32.totalorder %v2958_v10, %v2967_v21  ;;  %vm1090_vm4 = vcmp.eq.s32.totalorder %v2958_v10, %v2969_v22 }
 0x126   : > { %1893 = vmatmul.mubr.f32.gmra.mxu0 %v2876_v62 }
 0x127   : > { %1895 = vmatprep.mubr.f32.mxu0 %v2860_v58 }
 0x12a   : > { %1896 = vmatmul.mubr.f32.gmra.mxu0 %v3250_v3 }
 0x12b   : > { %1898 = vmatprep.mubr.f32.mxu0 %v3251_v4 }
 0x12e   : > { %1899 = vmatmul.mubr.f32.gmra.mxu0 %v3252_v5 }
 0x12f   : > { %1901 = vmatprep.mubr.f32.mxu0 %v3253_v7 }
 0x132   : > { %1902 = vmatmul.mubr.f32.gmra.mxu0 %v3254_v8 }
 0x133   : > { %1904 = vmatprep.mubr.f32.mxu0 %v3255_v6 }
 0x136   : > { %1905 = vmatmul.mubr.f32.gmra.mxu0 %v3256_v2 }
 0x186   : > { %v556_v23 = vpop.f32.mrf.mxu0 }
 0x187   : > { %v627_v24 = vpop.f32.mrf.mxu1  ;;  %v2976_v26 = vrot.slane %v556_v23, %v1073_v11 }
 0x188   : > { %v2978_v27 = vrot.slane %v627_v24, %v1073_v11  ;;  %v558_v30 = vpop.f32.mrf.mxu0 }
 0x189   : > { %v629_v31 = vpop.f32.mrf.mxu1  ;;  %v636_v32 = vcombine.low %v556_v23, %v558_v30  ;;  %v2987_v33 = vrot.slane %v558_v30, %v1073_v11  ;;  %v1107_v37 = vsel %vm2972_vm1, %v2976_v26, -inf }
 0x18a   : > { %v637_v35 = vcombine.low %v627_v24, %v629_v31  ;;  %v2989_v36 = vrot.slane %v629_v31, %v1073_v11  ;;  %v1109_v39 = vsel %vm1089_vm2, %v2978_v27, -inf }
 0x18b   : > { %v644_v40 = vrot.slane %v636_v32, %v643_v29  ;;  %v1108_v43 = vsel %vm1088_vm3, %v2987_v33, -inf }
 0x18c   : > { %v651_v41 = vrot.slane %v637_v35, %v643_v29  ;;  %v1110_v44 = vsel %vm1090_vm4, %v2989_v36, -inf  ;;  %v1111_v45 = vmax.f32 %v1107_v37, %v1108_v43 }
 0x18d   : > { %v1112_v47 = vmax.f32 %v1109_v39, %v1110_v44  ;;  %v3038_v39 = vld [vmem:[%s2618_s14] sm:$0xff] }
 0x18e   : > { %v652_v48 = vcombine.low %v644_v40, %v651_v41  ;;  %vm1117_vm7 = vcmp.gt.f32.partialorder %v3038_v39, -inf }
 0x18f   : > { %v1113_v49 = vmax.f32 %v1111_v45, %v1112_v47 }
 0x190   : > { %v659_v51 = vrot.slane %v652_v48, %v643_v29 }
 0x191   : > { %1114 = vmax.xlane.f32.xlu0 %v1113_v49 }
 0x192   : > { %665 = vst.msk [vmem:[%s2627_s3] sm:$0xf] %vm663_vm5, %v659_v51 }
 0x1a6   : > { %v3007_v53 = vpop.f32.mrf.mxu0 }
 0x1a8   : > { %v3009_v55 = vpop.f32.mrf.mxu0 }
 0x1a9   : > { %v3011_v16 = vpop.f32.mrf.mxu1 }
 0x1aa   : > { %v1849_v56 = vpop.f32.mrf.mxu0 }
 0x1ab   : > { %v3013_v17 = vpop.f32.mrf.mxu1 }
 0x1ac   : > { %v758_v57 = vpop.f32.mrf.mxu0 }
 0x1ad   : > { %v3015_v18 = vpop.f32.mrf.mxu1 }
 0x1ae   : > { %v1852_v58 = vpop.f32.mrf.mxu0 }
 0x1af   : > { %v3017_v19 = vpop.f32.mrf.mxu1 }
 0x1b0   : > { %v768_v59 = vpop.f32.mrf.mxu0 }
 0x1b1   : > { %v3019_v23 = vpop.f32.mrf.mxu1 }
 0x1b2   : > { %v1855_v60 = vpop.f32.mrf.mxu0 }
 0x1b3   : > { %v3021_v24 = vpop.f32.mrf.mxu1 }
 0x1b4   : > { %v778_v61 = vpop.f32.mrf.mxu0 }
 0x1b5   : > { %v3024_v29 = vpop.f32.mrf.mxu1 }
 0x1b6   : > { %v1858_v62 = vpop.f32.mrf.mxu0 }
 0x1b7   : > { %v3027_v30 = vpop.f32.mrf.mxu1 }
 0x1b8   : > { %v788_v63 = vpop.f32.mrf.mxu0 }
 0x1b9   : > { %v3029_v31 = vpop.f32.mrf.mxu1 }
 0x1ba   : > { %v1861_v0 = vpop.f32.mrf.mxu0 }
 0x1bb   : > { %v3031_v32 = vpop.f32.mrf.mxu1 }
 0x1bc   : > { %v798_v38 = vpop.f32.mrf.mxu0 }
 0x1bd   : > { %v3033_v35 = vpop.f32.mrf.mxu1 }
 0x1be   : > { %v1864_v42 = vpop.f32.mrf.mxu0 }
 0x1bf   : > { %v3035_v37 = vpop.f32.mrf.mxu1 }
 0x1c0   : > { %v808_v46 = vpop.f32.mrf.mxu0 }
 0x1c1   : > { %v3040_v40 = vpop.f32.mrf.mxu1 }
 0x1c2   : > { %v1867_v50 = vpop.f32.mrf.mxu0 }
 0x1c3   : > { %v3045_v44 = vpop.f32.mrf.mxu1 }
 0x1c4   : > { %v818_v54 = vpop.f32.mrf.mxu0 }
 0x1c5   : > { %v1930_v45 = vpop.f32.mrf.mxu1 }
 0x1c6   : > { %v1870_v1 = vpop.f32.mrf.mxu0 }
 0x1c7   : > { %v1028_v47 = vpop.f32.mrf.mxu1 }
 0x1c8   : > { %v828_v28 = vpop.f32.mrf.mxu0 }
 0x1c9   : > { %v1933_v48 = vpop.f32.mrf.mxu1 }
 0x1ca   : > { %v1873_v34 = vpop.f32.mrf.mxu0 }
 0x1cb   : > { %v1038_v49 = vpop.f32.mrf.mxu1 }
 0x1cc   : > { %v838_v3 = vpop.f32.mrf.mxu0 }
 0x1cd   : > { %v1936_v51 = vpop.f32.mrf.mxu1 }
 0x1ce   : > { %v1876_v4 = vpop.f32.mrf.mxu0 }
 0x1cf   : > { %v1048_v52 = vpop.f32.mrf.mxu1 }
 0x1d0   : > { %v848_v5 = vpop.f32.mrf.mxu0 }
 0x1d2   : > { %v1879_v7 = vpop.f32.mrf.mxu0 }
 0x1d4   : > { %v858_v8 = vpop.f32.mrf.mxu0 }
 0x1d6   : > { %v1882_v6 = vpop.f32.mrf.mxu0 }
 0x1d8   : > { %v868_v2 = vpop.f32.mrf.mxu0 }
 0x1da   : > { %v1885_v9 = vpop.f32.mrf.mxu0 }
 0x1dc   : > { %v878_v11 = vpop.f32.mrf.mxu0 }
 0x1de   : > { %v1888_v12 = vpop.f32.mrf.mxu0 }
 0x1e0   : > { %v888_v13 = vpop.f32.mrf.mxu0 }
 0x1e2   : > { %v1891_v14 = vpop.f32.mrf.mxu0 }
 0x1e3   : > { %1742 = vmatprep.subr.mxu1 %v1891_v14 }
 0x1e4   : > { %v898_v15 = vpop.f32.mrf.mxu0  ;;  %1743 = vmatpush3.msra.mxu1 %v1867_v50 }
 0x1e5   : > { %1744 = vmatprep.subr.mxu1 %v898_v15 }
 0x1e6   : > { %1745 = vmatpush3.msra.mxu1 %v818_v54 }
 0x1e7   : > { %1746 = vmatprep.subr.mxu1 %v1888_v12 }
 0x1e8   : > { %1747 = vmatpush3.msra.mxu1 %v1864_v42 }
 0x1e9   : > { %1748 = vmatprep.subr.mxu1 %v888_v13 }
 0x1ea   : > { %1749 = vmatpush3.msra.mxu1 %v808_v46 }
 0x1eb   : > { %1750 = vmatprep.subr.mxu1 %v1885_v9 }
 0x1ec   : > { %1751 = vmatpush3.msra.mxu1 %v1861_v0 }
 0x1ed   : > { %1752 = vmatprep.subr.mxu1 %v878_v11 }
 0x1ee   : > { %1753 = vmatpush3.msra.mxu1 %v798_v38 }
 0x1ef   : > { %1754 = vmatprep.subr.mxu1 %v1882_v6 }
 0x1f0   : > { %1755 = vmatpush3.msra.mxu1 %v1858_v62 }
 0x1f1   : > { %1756 = vmatprep.subr.mxu1 %v868_v2 }
 0x1f2   : > { %1757 = vmatpush3.msra.mxu1 %v788_v63 }
 0x1f3   : > { %1758 = vmatprep.subr.mxu1 %v1879_v7 }
 0x1f4   : > { %1759 = vmatpush3.msra.mxu1 %v1855_v60 }
 0x1f5   : > { %1760 = vmatprep.subr.mxu1 %v858_v8 }
 0x1f6   : > { %1761 = vmatpush3.msra.mxu1 %v778_v61 }
 0x1f7   : > { %1762 = vmatprep.subr.mxu1 %v1876_v4 }
 0x1f8   : > { %1763 = vmatpush3.msra.mxu1 %v1852_v58 }
 0x1f9   : > { %1764 = vmatprep.subr.mxu1 %v848_v5 }
 0x1fa   : > { %1765 = vmatpush3.msra.mxu1 %v768_v59 }
 0x1fb   : > { %1766 = vmatprep.subr.mxu1 %v1873_v34 }
 0x1fc   : > { %1767 = vmatpush3.msra.mxu1 %v1849_v56 }
 0x1fd   : > { %1768 = vmatprep.subr.mxu1 %v838_v3 }
 0x1fe   : > { %1769 = vmatpush3.msra.mxu1 %v758_v57 }
 0x1ff   : > { %1770 = vmatprep.subr.mxu1 %v1870_v1 }
 0x200   : > { %1771 = vmatpush3.msra.mxu1 %v3007_v53  ;;  %v1939_v53 = vpop.f32.mrf.mxu1 }
 0x201   : > { %1772 = vmatprep.subr.mxu1 %v828_v28 }
 0x202   : > { %1773 = vmatpush3.msra.mxu1 %v3009_v55  ;;  %v3047_v55 = vpop.f32.mrf.mxu0  ;;  %v1058_v4 = vpop.f32.mrf.mxu1 }
 0x203   : > { %1777 = vmatprep.subr.mxu1 %v1939_v53 }
 0x204   : > { %v3053_v0 = vpop.f32.mrf.mxu0 }
 0x206   : > { %v1897_v42 = vpop.f32.mrf.mxu0 }
 0x208   : > { %v918_v46 = vpop.f32.mrf.mxu0 }
 0x20a   : > { %v1900_v50 = vpop.f32.mrf.mxu0 }
 0x21a   : > { %v1115_v41 = vpop.xlane.xlu0 %1114 }
 0x21b   : > { %v1116_v43 = vmax.f32 %v3038_v39, %v1115_v41 }
 0x21d   : > { %1302 = vst.msk [vmem:[%s2618_s14] sm:$0xff] %vm1151_vm6, %v1116_v43  ;;  %1124 = vperm.xlu0 %2101, %v1116_v43  }
 0x298   : > { %v1125_v56 = vpop.permute.xlu0 %1124 }
 0x299   : > { %v1127_v57 = vsub.f32 %v2976_v26, %v1125_v56  ;;  %v1128_v58 = vsub.f32 %v2987_v33, %v1125_v56  ;;  %v1129_v59 = vsub.f32 %v2978_v27, %v1125_v56  ;;  %v1130_v60 = vsub.f32 %v2989_v36, %v1125_v56  ;;  %v928_v27 = vpop.f32.mrf.mxu0 }
 0x29a   : > { %v1118_v33 = vsub.f32 %v3038_v39, %v1116_v43 }
 0x29b   : > { %v1131_v61 = vmul.f32 1.442695, %v1127_v57  ;;  %v1133_v62 = vmul.f32 1.442695, %v1128_v58  ;;  %v1135_v63 = vmul.f32 1.442695, %v1129_v59  ;;  %v1903_v21 = vpop.f32.mrf.mxu0 }
 0x29c   : > { %v1137_v38 = vmul.f32 1.442695, %v1130_v60  ;;  %v1119_v7 = vmul.f32 1.442695, %v1118_v33 }
 0x29d   : > { %2103 = vpow2.f32 %v1131_v61  ;;  %v938_v2 = vpop.f32.mrf.mxu0 }
 0x29e   : > { %2105 = vpow2.f32 %v1133_v62 }
 0x29f   : > { %2107 = vpow2.f32 %v1135_v63  ;;  %v1906_v9 = vpop.f32.mrf.mxu0 }
 0x2a0   : > { %2109 = vpow2.f32 %v1137_v38 }
 0x2a1   : > { %2111 = vpow2.f32 %v1119_v7  ;;  %v948_v22 = vpop.f32.mrf.mxu0 }
 0x2aa   : > { %v2104_v26 = vpop.eup %2103 }
 0x2ab   : > { %v2106_v54 = vpop.eup %2105  ;;  %v1139_v36 = vsel %vm2972_vm1, %v2104_v26, 0.0 }
 0x2ac   : > { %v2108_v1 = vpop.eup %2107  ;;  %1579 = vmatprep.mubr.msk.f32.mxu1 %vm1088_vm3, %v2106_v54  ;;  %v1140_v28 = vsel %vm1088_vm3, %v2106_v54, 0.0 }
 0x2ad   : > { %v2110_v34 = vpop.eup %2109  ;;  %1580 = vmatmul.mubr.msk.f32.vlgmr.msra.gmra.mxu1 %vm2972_vm1, %v2104_v26  ;;  %v1145_v3 = vadd.f32 %v1140_v28, %v1139_v36  ;;  %v1141_v5 = vsel %vm1089_vm2, %v2108_v1, 0.0 }
 0x2ae   : > { %1778 = vmatpush3.msra.mxu1 %v3019_v23  ;;  %1581 = vmatprep.mubr.msk.f32.mxu1 %vm1090_vm4, %v2110_v34  ;;  %v1142_v25 = vsel %vm1090_vm4, %v2110_v34, 0.0  ;;  %v2112_v11 = vpop.eup %2111 }
 0x2af   : > { %1779 = vmatprep.subr.mxu1 %v1058_v4  ;;  %v1146_v8 = vadd.f32 %v1145_v3, %v1141_v5  ;;  %v1121_v12 = vsel %vm1117_vm7, %v2112_v11, 0.0 }
 0x2b0   : > { %1780 = vmatpush3.msra.mxu1 %v3021_v24 }
 0x2b1   : > { %1781 = vmatprep.subr.mxu1 %v1936_v51  ;;  %v1147_v6 = vadd.f32 %v1146_v8, %v1142_v25 }
 0x2b2   : > { %1782 = vmatpush3.msra.mxu1 %v3015_v18 }
 0x2b3   : > { %1783 = vmatprep.subr.mxu1 %v1048_v52  ;;  %1148 = vadd.xlane.f32.xlu1 %v1147_v6 }
 0x2b4   : > { %1784 = vmatpush3.msra.mxu1 %v3017_v19 }
 0x2b5   : > { %1785 = vmatprep.subr.mxu1 %v1933_v48 }
 0x2b6   : > { %1786 = vmatpush3.msra.mxu1 %v3011_v16 }
 0x2b7   : > { %1787 = vmatprep.subr.mxu1 %v1038_v49 }
 0x2b8   : > { %1788 = vmatpush3.msra.mxu1 %v3013_v17 }
 0x2b9   : > { %1789 = vmatprep.subr.mxu1 %v1930_v45 }
 0x2ba   : > { %1790 = vmatpush3.msra.mxu1 %v1906_v9 }
 0x2bb   : > { %1791 = vmatprep.subr.mxu1 %v1028_v47 }
 0x2bc   : > { %1792 = vmatpush3.msra.mxu1 %v948_v22 }
 0x2bd   : > { %1793 = vmatprep.subr.mxu1 %v3040_v40 }
 0x2be   : > { %1794 = vmatpush3.msra.mxu1 %v1903_v21 }
 0x2bf   : > { %1795 = vmatprep.subr.mxu1 %v3045_v44 }
 0x2c0   : > { %1796 = vmatpush3.msra.mxu1 %v938_v2 }
 0x2c1   : > { %1797 = vmatprep.subr.mxu1 %v3033_v35 }
 0x2c2   : > { %1798 = vmatpush3.msra.mxu1 %v1900_v50 }
 0x2c3   : > { %1799 = vmatprep.subr.mxu1 %v3035_v37 }
 0x2c4   : > { %1800 = vmatpush3.msra.mxu1 %v928_v27  ;;  %1156 = vperm.xlu1 %2102, %v1121_v12  }
 0x2c5   : > { %1801 = vmatprep.subr.mxu1 %v3029_v31 }
 0x2c6   : > { %1802 = vmatpush3.msra.mxu1 %v1897_v42 }
 0x2c7   : > { %1803 = vmatprep.subr.mxu1 %v3031_v32 }
 0x2c8   : > { %1804 = vmatpush3.msra.mxu1 %v918_v46 }
 0x2c9   : > { %1805 = vmatprep.subr.mxu1 %v3024_v29 }
 0x2ca   : > { %1806 = vmatpush3.msra.mxu1 %v3047_v55 }
 0x2cb   : > { %1807 = vmatprep.subr.mxu1 %v3027_v30 }
 0x2cc   : > { %1808 = vmatpush3.msra.mxu1 %v3053_v0 }
 0x2cd   : > { %1582 = vmatmul.mubr.msk.f32.vlgmr.msra.gmra.mxu1 %vm1089_vm2, %v2108_v1 }
 0x2ce   : > { %2208 = shalt.err (!%p2205_p9)
}
 0x2cf   : > { %s2209_s3 = scalar_lea.hbm %s1344_s24, 64  ;;  %s2213_s13 = scalar_lea.hbm %s3262_s7, 256 }
 0x2d0   : > { %p2210_p10 = scmp.ne.s32.totalorder %s1344_s24, %s2209_s3  ;;  %p2214_p5 = scmp.lt.s32.totalorder %s1344_s24, %s3262_s7 }
 0x2d1   : > { %p2215_p12 = scmp.lt.s32.totalorder %s2213_s13, %s2209_s3 }
 0x2d2   : > { %p2211_p11 = pnand %p2210_p10, %p2525_p13 }
 0x2d3   : > { %p2216_p1 = por %p2215_p12, %p2214_p5 }
 0x2d4   : > { %p2212_p2 = pneg %p2211_p11 }
 0x2d6   : > { %p2217_p4 = pnand %p2216_p1, %p2212_p2 }
 0x2d8   : > { %2220 = shalt.err (!%p2217_p4)
}
 0x2d9   : > { %1981 = dma.vmem_to_hbm [thread:$0]  (%p2525_p13), %s1347_s5, 64, %s1344_s24, %s1309_s18   ;;  %v1143_v10 = vld [vmem:[%s2623_s12] sm:$0xff]  ;;  %v1153_v18 = vld [vmem:[%s2625_s19] sm:$0xff] }
 0x2da   : > { %v1144_v20 = vmul.f32 %v1143_v10, %v1121_v12  ;;  %s3263_s20 = sld [smem:[#allocation20_spill]]  ;;  %s1585_s17 = sshll.u32 %s2341_s8, 7 }
 0x2db   : > { %s1330_s23 = sshll.u32 %s2625_s19, 4  ;;  %s3264_s30 = sld [smem:[#allocation36_spill]]  ;;  %s1331_s23 = int_to_ptr.vmem [resolvable:$true] %s1330_s23 }
 0x2dc   : > { %s3266_s24 = sand.u32 1, %s2317_s25   ;;  %s2221_s22 = scalar_lea.vmem %s1331_s23, 128 }
 0x2dd   : > { %s1304_s21 = scalar_lea.sflag [#allocation4], %s3266_s24  ;;  %p2222_p13 = scmp.ne.s32.totalorder %s1331_s23, %s2221_s22 }
 0x2de   : > { %s2365_s9 = smov [#allocation8]  }
 0x2df   : > { %s2225_s3 = sshll.u32 %s2365_s9, 4  ;;  %s2226_s3 = int_to_ptr.vmem [resolvable:$false] %s2225_s3 }
 0x2e0   : > { %p3267_p8 = scmp.ne.s32.totalorder %s3263_s20, 0  ;;  %s2227_s8 = scalar_lea.vmem %s2226_s3, 256 }
 0x2e1   : > { %s3265_s18 = smov %s3264_s30  ;;  %p2228_p7 = scmp.lt.s32.totalorder %s1331_s23, %s2226_s3 }
 0x2e2   : > { %p2223_p3 = pnand %p2222_p13, %p3267_p8  ;;  %p2229_p6 = scmp.lt.s32.totalorder %s2227_s8, %s2221_s22 }
 0x2e4   : > { %p2224_p0 = pneg %p2223_p3  ;;  %p2230_p9 = por %p2229_p6, %p2228_p7 }
 0x2e6   : > { %p2231_p10 = pnand %p2230_p9, %p2224_p0 }
 0x33c   : > { %v1149_v13 = vpop.xlane.xlu1 %1148 }
 0x33d   : > { %v1150_v14 = vadd.f32 %v1149_v13, %v1144_v20 }
 0x33f   : > { %1152 = vst.msk [vmem:[%s2623_s12] sm:$0xff] %vm1151_vm6, %v1150_v14  ;;  %s1328_s12 = scalar_lea.hbm %s3264_s30, %s1585_s17 }
 0x340   : > { %v1157_v19 = vpop.permute.xlu1 %1156 }
 0x341   : > { %v1159_v30 = vmul.f32 %v1157_v19, %v1153_v18 }
 0x36d   : > { %v1774_v15 = vpop.f32.mrf.mxu1 }
 0x36f   : > { %v1775_v16 = vpop.f32.mrf.mxu1 }
 0x370   : > { %v1776_v24 = vadd.f32 %v1775_v16, %v1774_v15 }
 0x38d   : > { %v1809_v17 = vpop.f32.mrf.mxu1 }
 0x38f   : > { %v1810_v23 = vpop.f32.mrf.mxu1 }
 0x390   : > { %v1811_v29 = vadd.f32 %v1810_v23, %v1809_v17 }
 0x392   : > { %v1297_v31 = vadd.f32 %v1811_v29, %v1776_v24 }
 0x394   : > { %v1300_v32 = vadd.f32 %v1297_v31, %v1159_v30 }
 0x396   : > { %1301 = vst [vmem:[%s2625_s19] sm:$0xff] %v1300_v32 }
 0x397   : > { %2234 = shalt.err (!%p2231_p10)
}
 0x398   : > { %s2235_s0 = scalar_lea.hbm %s1328_s12, 128  ;;  %s2239_s13 = scalar_lea.hbm %s3265_s18, 256 }
 0x399   : > { %p2236_p11 = scmp.ne.s32.totalorder %s1328_s12, %s2235_s0  ;;  %p2240_p12 = scmp.lt.s32.totalorder %s1328_s12, %s3265_s18 }
 0x39a   : > { %p2241_p1 = scmp.lt.s32.totalorder %s2239_s13, %s2235_s0 }
 0x39b   : > { %p2237_p2 = pnand %p2236_p11, %p3267_p8 }
 0x39c   : > { %p2242_p4 = por %p2241_p1, %p2240_p12 }
 0x39d   : > { %p2238_p5 = pneg %p2237_p2 }
 0x39f   : > { %p2243_p13 = pnand %p2242_p4, %p2238_p5 }
 0x3a1   : > { %2246 = shalt.err (!%p2243_p13)
}
 0x3a2   : > { %1980 = dma.vmem_to_hbm [thread:$0]  (%p3267_p8), %s1331_s23, 128, %s1328_s12, %s1304_s21  }
 0x3a3 PF: > { %s3268_s17 = sld [smem:[#allocation16_spill]]  ;;  %p2005_p3 = scmp.ge.s32.totalorder %s2353_s11, 2 }
 0x3a4   : > { %s3269_s5 = sld [smem:[#allocation21_spill]] }
 0x3a9   : > { %s1364_s14 = sand.u32 1, %s3268_s17  }
 0x3aa   : > { %p3270_p0 = scmp.ne.s32.totalorder %s3269_s5, 0  ;;  %s1365_s30 = scalar_lea.sflag [#allocation4], %s1364_s14 }
 0x3ac   : > { %p1996_p7 = pnand %p2005_p3, %p3270_p0 }
 0x3ae   : > { %p1997_p6 = pneg %p1996_p7 }
 0x3b0   : > { %2304 = dma.done.wait (%p1997_p6), %s1365_s30, 128  }
 0x3b1   : > { %2306 = vsyncadd (%p1997_p6), %s1365_s30, 4294967168  ;;  %s3271_s24 = sld [smem:[#allocation17_spill]] }
 0x3b2   : > { %s3272_s22 = sld [smem:[#allocation22_spill]] }
 0x3b7   : > { %s1373_s9 = sand.u32 1, %s3271_s24  }
 0x3b8   : > { %p3273_p9 = scmp.ne.s32.totalorder %s3272_s22, 0  ;;  %s1374_s20 = scalar_lea.sflag [#allocation10], %s1373_s9 }
 0x3ba   : > { %p1999_p10 = pnand %p2005_p3, %p3273_p9 }
 0x3bc   : > { %p2000_p11 = pneg %p1999_p10 }
 0x3be   : > { %2308 = dma.done.wait (%p2000_p11), %s1374_s20, 64  }
 0x3bf   : > { %2310 = vsyncadd (%p2000_p11), %s1374_s20, 4294967232  ;;  %s30_s11 = sadd.s32 1, %s2353_s11   ;;  %s3274_s30 = sld [smem:[#allocation19_spill]] }
 0x3c0   : > { %p27_p8 = scmp.ge.s32.totalorder %s30_s11, 6   ;;  %s3275_s9 = sld [smem:[#allocation23_spill]] }
 0x3c1   : > { %s3276_s23 = sld [smem:[#allocation25_spill]]  ;;  %s3277_s24 = smov %s2317_s25 }
 0x3c2   : > { %s3278_s25 = smov %s2321_s26  ;;  %s3279_s26 = smov %s2545_s4 }
 0x3c3   : > { %s3280_s27 = smov %s2329_s28  ;;  %s3281_s28 = smov %s2333_s29 }
 0x3c4   : > { %s3282_s29 = smov %s2548_s15  ;;  %s3283_s8 = smov %s2349_s10 }
 0x3c5   :  { %29 = sbr.rel (!%p27_p8) target bundleno = 20 (0x14), region = 143 }
 0x3c7   : > { %s3284_s10 = smov %s3276_s23 }
 0x3ca   :  { %1393 = vsyncpa [#allocation3], 1 }
 0x3cb   :  { %1395 = vsyncpa [#allocation3 + $0x1], 1 }
 0x3cc   :  { %1396 = vsyncpa [#allocation6], 1 }
 0x3cd   :  { %1398 = vsyncpa [#allocation6 + $0x1], 1 }
 0x3ce   :  { %1399 = vsyncpa [#allocation4], 1 }
 0x3cf   :  { %1401 = vsyncpa [#allocation4 + $0x1], 1 }
 0x3d0   :  { %1402 = vsyncpa [#allocation10], 1 }
 0x3d1   :  { %1404 = vsyncpa [#allocation10 + $0x1], 1 }

</bundles_post_ra>
